<compile_context>
chip_gen: v6e
topology: v6e:2x2x1
jax: 0.10.0
libtpu: 0.0.40
codegen_flags: <defaults>
</compile_context>

<pallas_src>
import functools

import jax
import jax.numpy as jnp
from jax import lax
from jax.experimental import pallas as pl
from jax.experimental.pallas import tpu as pltpu


def _wkmeans_kernel(aug_ref, scores_ref, c0_ref,
                    gamma_ref, pi_ref, nxyz_ref, nfeat_ref,
                    *, n_channels, iters, tau):
    f32 = jnp.float32
    bf16 = jnp.bfloat16
    eps = 1e-8
    inv_tau = 1.0 / tau
    c = n_channels

    aug = aug_ref[0].astype(f32)          # (C+4, N) = [feats ; ones ; xyz]
    s = scores_ref[0].astype(f32)         # (1, N)
    centers0 = c0_ref[0].astype(f32)      # (K, C)

    aug_bf = aug.astype(bf16)             # bf16 copy for in-loop MXU operands
    feats_bf = aug_bf[:c, :]              # (C, N)

    def assign(centers, exact):
        # cross = centers @ feats  -> (K, N); softmax over K (sublane axis).
        cross = lax.dot_general(centers.astype(bf16), feats_bf,
                                (((1,), (0,)), ((), ())),
                                preferred_element_type=f32)          # (K, N)
        c2 = jnp.sum(centers * centers, axis=1, keepdims=True)       # (K, 1)
        # ||f||^2 dropped: softmax over K is invariant to per-point constants.
        logits = (2.0 * cross - c2) * inv_tau
        m = jnp.max(logits, axis=0, keepdims=True)                   # (1, N)
        e = jnp.exp(logits - m)                                      # (K, N)
        denom = jnp.sum(e, axis=0, keepdims=True) + eps              # (1, N)
        if exact:
            return e / denom                                          # exact norm
        return e * pl.reciprocal(denom, approx=True)                  # (K, N)

    def aggregate(gamma, rhs):
        # wg (K,N) @ [feats|1|xyz]^T -> (K, C+4) = [num | pi | node_xyz_num]
        wg = gamma * s                                               # (K, N)
        return lax.dot_general(wg.astype(rhs.dtype), rhs,
                               (((1,), (1,)), ((), ())),
                               preferred_element_type=f32)           # (K, C+4)

    def body(_, centers):
        gamma = assign(centers, exact=False)
        agg = aggregate(gamma, aug_bf)
        inv_pi = pl.reciprocal(agg[:, c:c + 1] + eps, approx=True)   # (K, 1)
        return agg[:, :c] * inv_pi                                   # new centers

    centers = lax.fori_loop(0, iters - 1, body, centers0, unroll=True)

    # Final iteration: keep gamma; everything in exact f32 for accurate outputs.
    gamma = assign(centers, exact=True)                              # (K, N)
    agg = aggregate(gamma, aug)                                      # (K, C+4)
    pi_col = agg[:, c:c + 1]                                         # (K, 1)
    node_feats = agg[:, :c] / (pi_col + eps)                         # (K, C)
    node_xyz = agg[:, c + 1:] / (pi_col + eps)                       # (K, 3)
    pi = pi_col / (jnp.sum(pi_col) + eps)                            # mixture weights

    gamma_ref[0] = gamma.astype(gamma_ref.dtype)
    pi_ref[0] = pi.astype(pi_ref.dtype)
    nxyz_ref[0] = node_xyz.astype(nxyz_ref.dtype)
    nfeat_ref[0] = node_feats.astype(nfeat_ref.dtype)


def clustering_forward(xyz, feats, o_scores, n_clusters, iters=10, tau=1.0):
    """Matches Clustering.forward: xyz [B,3,N], feats [B,C,N], o_scores [B,N]."""
    f32 = jnp.float32
    feats = feats.astype(f32)
    xyz = xyz.astype(f32)
    b, c, n = feats.shape
    d = xyz.shape[1]
    k = n_clusters

    # Augmented channel-first operand: [feats ; ones ; xyz]  -> (B, C+1+3, N).
    aug = jnp.concatenate([feats, jnp.ones((b, 1, n), f32), xyz], axis=1)
    scores = o_scores.astype(f32)[:, None, :]                        # (B, 1, N)

    # Deterministic evenly-spaced seeding (strided gather, done in the wrapper).
    stride = max(n // k, 1)
    idx = jnp.minimum(jnp.arange(k, dtype=jnp.int32) * stride, n - 1)
    centers0 = jnp.transpose(jnp.take(feats, idx, axis=2), (0, 2, 1))  # (B, K, C)

    kernel = functools.partial(_wkmeans_kernel, n_channels=c, iters=iters, tau=tau)

    out_shapes = (
        jax.ShapeDtypeStruct((b, k, n), f32),   # gamma (lane-dense, K x N)
        jax.ShapeDtypeStruct((b, k, 1), f32),   # pi
        jax.ShapeDtypeStruct((b, k, d), f32),   # node_xyz
        jax.ShapeDtypeStruct((b, k, c), f32),   # node_feats
    )

    grid_spec = pltpu.PrefetchScalarGridSpec(
        num_scalar_prefetch=0,
        grid=(b,),
        in_specs=[
            pl.BlockSpec((1, c + 1 + d, n), lambda i: (i, 0, 0)),
            pl.BlockSpec((1, 1, n), lambda i: (i, 0, 0)),
            pl.BlockSpec((1, k, c), lambda i: (i, 0, 0)),
        ],
        out_specs=[
            pl.BlockSpec((1, k, n), lambda i: (i, 0, 0)),
            pl.BlockSpec((1, k, 1), lambda i: (i, 0, 0)),
            pl.BlockSpec((1, k, d), lambda i: (i, 0, 0)),
            pl.BlockSpec((1, k, c), lambda i: (i, 0, 0)),
        ],
    )

    gamma_kn, pi, node_xyz, node_feats = pl.pallas_call(
        kernel,
        out_shape=out_shapes,
        grid_spec=grid_spec,
        compiler_params=pltpu.CompilerParams(dimension_semantics=("parallel",)),
    )(aug, scores, centers0)

    gamma = jnp.transpose(gamma_kn, (0, 2, 1))   # (B, N, K) — module-facing layout
    return gamma, pi[:, :, 0], node_xyz, node_feats


if __name__ == "__main__":
    B, C, N, K = 2, 32, 64, 8
    key = jax.random.PRNGKey(0)
    k_xyz, k_feat, k_sc = jax.random.split(key, 3)

    xyz = jax.random.normal(k_xyz, (B, 3, N), dtype=jnp.float32)
    feats = jax.random.normal(k_feat, (B, C, N), dtype=jnp.float32)
    o_scores = jax.nn.sigmoid(jax.random.normal(k_sc, (B, N), dtype=jnp.float32))

    gamma, pi, node_xyz, node_feats = jax.block_until_ready(
        clustering_forward(xyz, feats, o_scores, n_clusters=K, iters=10, tau=1.0))

    assert gamma.shape == (B, N, K)
    assert pi.shape == (B, K)
    assert node_xyz.shape == (B, K, 3)
    assert node_feats.shape == (B, K, C)
    assert bool(jnp.all(jnp.isfinite(gamma)))
    assert bool(jnp.all(jnp.isfinite(pi)))
    assert bool(jnp.all(jnp.isfinite(node_xyz)))
    assert bool(jnp.all(jnp.isfinite(node_feats)))
    # soft assignments sum to 1 over clusters (exact f32 normalization)
    assert bool(jnp.allclose(jnp.sum(gamma, axis=-1), 1.0, atol=1e-3))
    # mixture weights sum to ~1
    assert bool(jnp.allclose(jnp.sum(pi, axis=-1), 1.0, atol=1e-3))

    print("KERNEL_OK")
</pallas_src>

<mosaic_0001>
module attributes {stable_mosaic.version = 11 : i64} {
  func.func @_wkmeans_kernel(%arg0: i32, %arg1: memref<1x36x64xf32, #tpu.memory_space<vmem>>, %arg2: memref<1x1x64xf32, #tpu.memory_space<vmem>>, %arg3: memref<1x8x32xf32, #tpu.memory_space<vmem>>, %arg4: memref<1x8x64xf32, #tpu.memory_space<vmem>>, %arg5: memref<1x8x1xf32, #tpu.memory_space<vmem>>, %arg6: memref<1x8x3xf32, #tpu.memory_space<vmem>>, %arg7: memref<1x8x32xf32, #tpu.memory_space<vmem>>) attributes {dimension_semantics = [#tpu.dimension_semantics<parallel>], iteration_bounds = array<i64: 2>, scalar_prefetch = 0 : i64, scratch_operands = 0 : i64, tpu.core_type = #tpu.core_type<tc>, window_params = [{transform_indices = @transform_0, window_bounds = array<i64: 1, 36, 64>}, {transform_indices = @transform_1, window_bounds = array<i64: 1, 1, 64>}, {transform_indices = @transform_2, window_bounds = array<i64: 1, 8, 32>}, {transform_indices = @transform_3, window_bounds = array<i64: 1, 8, 64>}, {transform_indices = @transform_4, window_bounds = array<i64: 1, 8, 1>}, {transform_indices = @transform_5, window_bounds = array<i64: 1, 8, 3>}, {transform_indices = @transform_6, window_bounds = array<i64: 1, 8, 32>}]} {
    %c0 = arith.constant 0 : index
    %c0_0 = arith.constant 0 : index
    %c0_1 = arith.constant 0 : index
    %0 = vector.load %arg1[%c0, %c0_0, %c0_1] : memref<1x36x64xf32, #tpu.memory_space<vmem>>, vector<1x36x64xf32>
    %1 = vector.shape_cast %0 : vector<1x36x64xf32> to vector<36x64xf32>
    %c0_2 = arith.constant 0 : index
    %c0_3 = arith.constant 0 : index
    %c0_4 = arith.constant 0 : index
    %2 = vector.load %arg2[%c0_2, %c0_3, %c0_4] : memref<1x1x64xf32, #tpu.memory_space<vmem>>, vector<1x1x64xf32>
    %3 = vector.shape_cast %2 : vector<1x1x64xf32> to vector<1x64xf32>
    %c0_5 = arith.constant 0 : index
    %c0_6 = arith.constant 0 : index
    %c0_7 = arith.constant 0 : index
    %4 = vector.load %arg3[%c0_5, %c0_6, %c0_7] : memref<1x8x32xf32, #tpu.memory_space<vmem>>, vector<1x8x32xf32>
    %5 = vector.shape_cast %4 : vector<1x8x32xf32> to vector<8x32xf32>
    %6 = arith.truncf %1 : vector<36x64xf32> to vector<36x64xbf16>
    %7 = vector.extract_strided_slice %6 {offsets = [0, 0], sizes = [32, 64], strides = [1, 1]} : vector<36x64xbf16> to vector<32x64xbf16>
    %c0_i32 = arith.constant 0 : i32
    %8 = arith.truncf %5 : vector<8x32xf32> to vector<8x32xbf16>
    %cst = arith.constant dense<0.000000e+00> : vector<8x64xf32>
    %9 = tpu.matmul %8, %7, %cst {dimension_numbers = #tpu.dot_dimension_numbers<[1], [0], [0], [1], [0, 0, 1, 1], [], []>} : vector<8x32xbf16>, vector<32x64xbf16>, vector<8x64xf32> -> vector<8x64xf32>
    %10 = arith.mulf %5, %5 : vector<8x32xf32>
    %cst_8 = arith.constant dense<0.000000e+00> : vector<8xf32>
    %11 = vector.multi_reduction <add>, %10, %cst_8 [1] : vector<8x32xf32> to vector<8xf32>
    %12 = vector.shape_cast %11 : vector<8xf32> to vector<8x1xf32>
    %cst_9 = arith.constant 2.000000e+00 : f32
    %13 = vector.broadcast %cst_9 : f32 to vector<8x64xf32>
    %14 = arith.mulf %13, %9 : vector<8x64xf32>
    %15 = vector.broadcast %12 : vector<8x1xf32> to vector<8x64xf32>
    %16 = arith.subf %14, %15 : vector<8x64xf32>
    %cst_10 = arith.constant 1.000000e+00 : f32
    %17 = vector.broadcast %cst_10 : f32 to vector<8x64xf32>
    %18 = arith.mulf %16, %17 : vector<8x64xf32>
    %cst_11 = arith.constant dense<0xFF800000> : vector<64xf32>
    %19 = vector.multi_reduction <maximumf>, %18, %cst_11 [0] : vector<8x64xf32> to vector<64xf32>
    %20 = vector.shape_cast %19 : vector<64xf32> to vector<1x64xf32>
    %21 = vector.broadcast %20 : vector<1x64xf32> to vector<8x64xf32>
    %22 = arith.subf %18, %21 : vector<8x64xf32>
    %23 = math.exp %22 : vector<8x64xf32>
    %cst_12 = arith.constant dense<0.000000e+00> : vector<64xf32>
    %24 = vector.multi_reduction <add>, %23, %cst_12 [0] : vector<8x64xf32> to vector<64xf32>
    %25 = vector.shape_cast %24 : vector<64xf32> to vector<1x64xf32>
    %cst_13 = arith.constant 9.99999993E-9 : f32
    %26 = vector.broadcast %cst_13 : f32 to vector<1x64xf32>
    %27 = arith.addf %25, %26 : vector<1x64xf32>
    %28 = tpu.reciprocal %27 {approx = true} : vector<1x64xf32> -> vector<1x64xf32>
    %29 = vector.broadcast %28 : vector<1x64xf32> to vector<8x64xf32>
    %30 = arith.mulf %23, %29 : vector<8x64xf32>
    %31 = vector.broadcast %3 : vector<1x64xf32> to vector<8x64xf32>
    %32 = arith.mulf %30, %31 : vector<8x64xf32>
    %33 = arith.truncf %32 : vector<8x64xf32> to vector<8x64xbf16>
    %cst_14 = arith.constant dense<0.000000e+00> : vector<8x36xf32>
    %34 = tpu.matmul %33, %6, %cst_14 {dimension_numbers = #tpu.dot_dimension_numbers<[1], [1], [0], [0], [0, 0, 1, 0], [], []>} : vector<8x64xbf16>, vector<36x64xbf16>, vector<8x36xf32> -> vector<8x36xf32>
    %35 = vector.extract_strided_slice %34 {offsets = [0, 32], sizes = [8, 1], strides = [1, 1]} : vector<8x36xf32> to vector<8x1xf32>
    %cst_15 = arith.constant 9.99999993E-9 : f32
    %36 = vector.broadcast %cst_15 : f32 to vector<8x1xf32>
    %37 = arith.addf %35, %36 : vector<8x1xf32>
    %38 = tpu.reciprocal %37 {approx = true} : vector<8x1xf32> -> vector<8x1xf32>
    %39 = vector.extract_strided_slice %34 {offsets = [0, 0], sizes = [8, 32], strides = [1, 1]} : vector<8x36xf32> to vector<8x32xf32>
    %40 = vector.broadcast %38 : vector<8x1xf32> to vector<8x32xf32>
    %41 = arith.mulf %39, %40 : vector<8x32xf32>
    %c1_i32 = arith.constant 1 : i32
    %42 = arith.truncf %41 : vector<8x32xf32> to vector<8x32xbf16>
    %cst_16 = arith.constant dense<0.000000e+00> : vector<8x64xf32>
    %43 = tpu.matmul %42, %7, %cst_16 {dimension_numbers = #tpu.dot_dimension_numbers<[1], [0], [0], [1], [0, 0, 1, 1], [], []>} : vector<8x32xbf16>, vector<32x64xbf16>, vector<8x64xf32> -> vector<8x64xf32>
    %44 = arith.mulf %41, %41 : vector<8x32xf32>
    %cst_17 = arith.constant dense<0.000000e+00> : vector<8xf32>
    %45 = vector.multi_reduction <add>, %44, %cst_17 [1] : vector<8x32xf32> to vector<8xf32>
    %46 = vector.shape_cast %45 : vector<8xf32> to vector<8x1xf32>
    %cst_18 = arith.constant 2.000000e+00 : f32
    %47 = vector.broadcast %cst_18 : f32 to vector<8x64xf32>
    %48 = arith.mulf %47, %43 : vector<8x64xf32>
    %49 = vector.broadcast %46 : vector<8x1xf32> to vector<8x64xf32>
    %50 = arith.subf %48, %49 : vector<8x64xf32>
    %cst_19 = arith.constant 1.000000e+00 : f32
    %51 = vector.broadcast %cst_19 : f32 to vector<8x64xf32>
    %52 = arith.mulf %50, %51 : vector<8x64xf32>
    %cst_20 = arith.constant dense<0xFF800000> : vector<64xf32>
    %53 = vector.multi_reduction <maximumf>, %52, %cst_20 [0] : vector<8x64xf32> to vector<64xf32>
    %54 = vector.shape_cast %53 : vector<64xf32> to vector<1x64xf32>
    %55 = vector.broadcast %54 : vector<1x64xf32> to vector<8x64xf32>
    %56 = arith.subf %52, %55 : vector<8x64xf32>
    %57 = math.exp %56 : vector<8x64xf32>
    %cst_21 = arith.constant dense<0.000000e+00> : vector<64xf32>
    %58 = vector.multi_reduction <add>, %57, %cst_21 [0] : vector<8x64xf32> to vector<64xf32>
    %59 = vector.shape_cast %58 : vector<64xf32> to vector<1x64xf32>
    %cst_22 = arith.constant 9.99999993E-9 : f32
    %60 = vector.broadcast %cst_22 : f32 to vector<1x64xf32>
    %61 = arith.addf %59, %60 : vector<1x64xf32>
    %62 = tpu.reciprocal %61 {approx = true} : vector<1x64xf32> -> vector<1x64xf32>
    %63 = vector.broadcast %62 : vector<1x64xf32> to vector<8x64xf32>
    %64 = arith.mulf %57, %63 : vector<8x64xf32>
    %65 = vector.broadcast %3 : vector<1x64xf32> to vector<8x64xf32>
    %66 = arith.mulf %64, %65 : vector<8x64xf32>
    %67 = arith.truncf %66 : vector<8x64xf32> to vector<8x64xbf16>
    %cst_23 = arith.constant dense<0.000000e+00> : vector<8x36xf32>
    %68 = tpu.matmul %67, %6, %cst_23 {dimension_numbers = #tpu.dot_dimension_numbers<[1], [1], [0], [0], [0, 0, 1, 0], [], []>} : vector<8x64xbf16>, vector<36x64xbf16>, vector<8x36xf32> -> vector<8x36xf32>
    %69 = vector.extract_strided_slice %68 {offsets = [0, 32], sizes = [8, 1], strides = [1, 1]} : vector<8x36xf32> to vector<8x1xf32>
    %cst_24 = arith.constant 9.99999993E-9 : f32
    %70 = vector.broadcast %cst_24 : f32 to vector<8x1xf32>
    %71 = arith.addf %69, %70 : vector<8x1xf32>
    %72 = tpu.reciprocal %71 {approx = true} : vector<8x1xf32> -> vector<8x1xf32>
    %73 = vector.extract_strided_slice %68 {offsets = [0, 0], sizes = [8, 32], strides = [1, 1]} : vector<8x36xf32> to vector<8x32xf32>
    %74 = vector.broadcast %72 : vector<8x1xf32> to vector<8x32xf32>
    %75 = arith.mulf %73, %74 : vector<8x32xf32>
    %c2_i32 = arith.constant 2 : i32
    %76 = arith.truncf %75 : vector<8x32xf32> to vector<8x32xbf16>
    %cst_25 = arith.constant dense<0.000000e+00> : vector<8x64xf32>
    %77 = tpu.matmul %76, %7, %cst_25 {dimension_numbers = #tpu.dot_dimension_numbers<[1], [0], [0], [1], [0, 0, 1, 1], [], []>} : vector<8x32xbf16>, vector<32x64xbf16>, vector<8x64xf32> -> vector<8x64xf32>
    %78 = arith.mulf %75, %75 : vector<8x32xf32>
    %cst_26 = arith.constant dense<0.000000e+00> : vector<8xf32>
    %79 = vector.multi_reduction <add>, %78, %cst_26 [1] : vector<8x32xf32> to vector<8xf32>
    %80 = vector.shape_cast %79 : vector<8xf32> to vector<8x1xf32>
    %cst_27 = arith.constant 2.000000e+00 : f32
    %81 = vector.broadcast %cst_27 : f32 to vector<8x64xf32>
    %82 = arith.mulf %81, %77 : vector<8x64xf32>
    %83 = vector.broadcast %80 : vector<8x1xf32> to vector<8x64xf32>
    %84 = arith.subf %82, %83 : vector<8x64xf32>
    %cst_28 = arith.constant 1.000000e+00 : f32
    %85 = vector.broadcast %cst_28 : f32 to vector<8x64xf32>
    %86 = arith.mulf %84, %85 : vector<8x64xf32>
    %cst_29 = arith.constant dense<0xFF800000> : vector<64xf32>
    %87 = vector.multi_reduction <maximumf>, %86, %cst_29 [0] : vector<8x64xf32> to vector<64xf32>
    %88 = vector.shape_cast %87 : vector<64xf32> to vector<1x64xf32>
    %89 = vector.broadcast %88 : vector<1x64xf32> to vector<8x64xf32>
    %90 = arith.subf %86, %89 : vector<8x64xf32>
    %91 = math.exp %90 : vector<8x64xf32>
    %cst_30 = arith.constant dense<0.000000e+00> : vector<64xf32>
    %92 = vector.multi_reduction <add>, %91, %cst_30 [0] : vector<8x64xf32> to vector<64xf32>
    %93 = vector.shape_cast %92 : vector<64xf32> to vector<1x64xf32>
    %cst_31 = arith.constant 9.99999993E-9 : f32
    %94 = vector.broadcast %cst_31 : f32 to vector<1x64xf32>
    %95 = arith.addf %93, %94 : vector<1x64xf32>
    %96 = tpu.reciprocal %95 {approx = true} : vector<1x64xf32> -> vector<1x64xf32>
    %97 = vector.broadcast %96 : vector<1x64xf32> to vector<8x64xf32>
    %98 = arith.mulf %91, %97 : vector<8x64xf32>
    %99 = vector.broadcast %3 : vector<1x64xf32> to vector<8x64xf32>
    %100 = arith.mulf %98, %99 : vector<8x64xf32>
    %101 = arith.truncf %100 : vector<8x64xf32> to vector<8x64xbf16>
    %cst_32 = arith.constant dense<0.000000e+00> : vector<8x36xf32>
    %102 = tpu.matmul %101, %6, %cst_32 {dimension_numbers = #tpu.dot_dimension_numbers<[1], [1], [0], [0], [0, 0, 1, 0], [], []>} : vector<8x64xbf16>, vector<36x64xbf16>, vector<8x36xf32> -> vector<8x36xf32>
    %103 = vector.extract_strided_slice %102 {offsets = [0, 32], sizes = [8, 1], strides = [1, 1]} : vector<8x36xf32> to vector<8x1xf32>
    %cst_33 = arith.constant 9.99999993E-9 : f32
    %104 = vector.broadcast %cst_33 : f32 to vector<8x1xf32>
    %105 = arith.addf %103, %104 : vector<8x1xf32>
    %106 = tpu.reciprocal %105 {approx = true} : vector<8x1xf32> -> vector<8x1xf32>
    %107 = vector.extract_strided_slice %102 {offsets = [0, 0], sizes = [8, 32], strides = [1, 1]} : vector<8x36xf32> to vector<8x32xf32>
    %108 = vector.broadcast %106 : vector<8x1xf32> to vector<8x32xf32>
    %109 = arith.mulf %107, %108 : vector<8x32xf32>
    %c3_i32 = arith.constant 3 : i32
    %110 = arith.truncf %109 : vector<8x32xf32> to vector<8x32xbf16>
    %cst_34 = arith.constant dense<0.000000e+00> : vector<8x64xf32>
    %111 = tpu.matmul %110, %7, %cst_34 {dimension_numbers = #tpu.dot_dimension_numbers<[1], [0], [0], [1], [0, 0, 1, 1], [], []>} : vector<8x32xbf16>, vector<32x64xbf16>, vector<8x64xf32> -> vector<8x64xf32>
    %112 = arith.mulf %109, %109 : vector<8x32xf32>
    %cst_35 = arith.constant dense<0.000000e+00> : vector<8xf32>
    %113 = vector.multi_reduction <add>, %112, %cst_35 [1] : vector<8x32xf32> to vector<8xf32>
    %114 = vector.shape_cast %113 : vector<8xf32> to vector<8x1xf32>
    %cst_36 = arith.constant 2.000000e+00 : f32
    %115 = vector.broadcast %cst_36 : f32 to vector<8x64xf32>
    %116 = arith.mulf %115, %111 : vector<8x64xf32>
    %117 = vector.broadcast %114 : vector<8x1xf32> to vector<8x64xf32>
    %118 = arith.subf %116, %117 : vector<8x64xf32>
    %cst_37 = arith.constant 1.000000e+00 : f32
    %119 = vector.broadcast %cst_37 : f32 to vector<8x64xf32>
    %120 = arith.mulf %118, %119 : vector<8x64xf32>
    %cst_38 = arith.constant dense<0xFF800000> : vector<64xf32>
    %121 = vector.multi_reduction <maximumf>, %120, %cst_38 [0] : vector<8x64xf32> to vector<64xf32>
    %122 = vector.shape_cast %121 : vector<64xf32> to vector<1x64xf32>
    %123 = vector.broadcast %122 : vector<1x64xf32> to vector<8x64xf32>
    %124 = arith.subf %120, %123 : vector<8x64xf32>
    %125 = math.exp %124 : vector<8x64xf32>
    %cst_39 = arith.constant dense<0.000000e+00> : vector<64xf32>
    %126 = vector.multi_reduction <add>, %125, %cst_39 [0] : vector<8x64xf32> to vector<64xf32>
    %127 = vector.shape_cast %126 : vector<64xf32> to vector<1x64xf32>
    %cst_40 = arith.constant 9.99999993E-9 : f32
    %128 = vector.broadcast %cst_40 : f32 to vector<1x64xf32>
    %129 = arith.addf %127, %128 : vector<1x64xf32>
    %130 = tpu.reciprocal %129 {approx = true} : vector<1x64xf32> -> vector<1x64xf32>
    %131 = vector.broadcast %130 : vector<1x64xf32> to vector<8x64xf32>
    %132 = arith.mulf %125, %131 : vector<8x64xf32>
    %133 = vector.broadcast %3 : vector<1x64xf32> to vector<8x64xf32>
    %134 = arith.mulf %132, %133 : vector<8x64xf32>
    %135 = arith.truncf %134 : vector<8x64xf32> to vector<8x64xbf16>
    %cst_41 = arith.constant dense<0.000000e+00> : vector<8x36xf32>
    %136 = tpu.matmul %135, %6, %cst_41 {dimension_numbers = #tpu.dot_dimension_numbers<[1], [1], [0], [0], [0, 0, 1, 0], [], []>} : vector<8x64xbf16>, vector<36x64xbf16>, vector<8x36xf32> -> vector<8x36xf32>
    %137 = vector.extract_strided_slice %136 {offsets = [0, 32], sizes = [8, 1], strides = [1, 1]} : vector<8x36xf32> to vector<8x1xf32>
    %cst_42 = arith.constant 9.99999993E-9 : f32
    %138 = vector.broadcast %cst_42 : f32 to vector<8x1xf32>
    %139 = arith.addf %137, %138 : vector<8x1xf32>
    %140 = tpu.reciprocal %139 {approx = true} : vector<8x1xf32> -> vector<8x1xf32>
    %141 = vector.extract_strided_slice %136 {offsets = [0, 0], sizes = [8, 32], strides = [1, 1]} : vector<8x36xf32> to vector<8x32xf32>
    %142 = vector.broadcast %140 : vector<8x1xf32> to vector<8x32xf32>
    %143 = arith.mulf %141, %142 : vector<8x32xf32>
    %c4_i32 = arith.constant 4 : i32
    %144 = arith.truncf %143 : vector<8x32xf32> to vector<8x32xbf16>
    %cst_43 = arith.constant dense<0.000000e+00> : vector<8x64xf32>
    %145 = tpu.matmul %144, %7, %cst_43 {dimension_numbers = #tpu.dot_dimension_numbers<[1], [0], [0], [1], [0, 0, 1, 1], [], []>} : vector<8x32xbf16>, vector<32x64xbf16>, vector<8x64xf32> -> vector<8x64xf32>
    %146 = arith.mulf %143, %143 : vector<8x32xf32>
    %cst_44 = arith.constant dense<0.000000e+00> : vector<8xf32>
    %147 = vector.multi_reduction <add>, %146, %cst_44 [1] : vector<8x32xf32> to vector<8xf32>
    %148 = vector.shape_cast %147 : vector<8xf32> to vector<8x1xf32>
    %cst_45 = arith.constant 2.000000e+00 : f32
    %149 = vector.broadcast %cst_45 : f32 to vector<8x64xf32>
    %150 = arith.mulf %149, %145 : vector<8x64xf32>
    %151 = vector.broadcast %148 : vector<8x1xf32> to vector<8x64xf32>
    %152 = arith.subf %150, %151 : vector<8x64xf32>
    %cst_46 = arith.constant 1.000000e+00 : f32
    %153 = vector.broadcast %cst_46 : f32 to vector<8x64xf32>
    %154 = arith.mulf %152, %153 : vector<8x64xf32>
    %cst_47 = arith.constant dense<0xFF800000> : vector<64xf32>
    %155 = vector.multi_reduction <maximumf>, %154, %cst_47 [0] : vector<8x64xf32> to vector<64xf32>
    %156 = vector.shape_cast %155 : vector<64xf32> to vector<1x64xf32>
    %157 = vector.broadcast %156 : vector<1x64xf32> to vector<8x64xf32>
    %158 = arith.subf %154, %157 : vector<8x64xf32>
    %159 = math.exp %158 : vector<8x64xf32>
    %cst_48 = arith.constant dense<0.000000e+00> : vector<64xf32>
    %160 = vector.multi_reduction <add>, %159, %cst_48 [0] : vector<8x64xf32> to vector<64xf32>
    %161 = vector.shape_cast %160 : vector<64xf32> to vector<1x64xf32>
    %cst_49 = arith.constant 9.99999993E-9 : f32
    %162 = vector.broadcast %cst_49 : f32 to vector<1x64xf32>
    %163 = arith.addf %161, %162 : vector<1x64xf32>
    %164 = tpu.reciprocal %163 {approx = true} : vector<1x64xf32> -> vector<1x64xf32>
    %165 = vector.broadcast %164 : vector<1x64xf32> to vector<8x64xf32>
    %166 = arith.mulf %159, %165 : vector<8x64xf32>
    %167 = vector.broadcast %3 : vector<1x64xf32> to vector<8x64xf32>
    %168 = arith.mulf %166, %167 : vector<8x64xf32>
    %169 = arith.truncf %168 : vector<8x64xf32> to vector<8x64xbf16>
    %cst_50 = arith.constant dense<0.000000e+00> : vector<8x36xf32>
    %170 = tpu.matmul %169, %6, %cst_50 {dimension_numbers = #tpu.dot_dimension_numbers<[1], [1], [0], [0], [0, 0, 1, 0], [], []>} : vector<8x64xbf16>, vector<36x64xbf16>, vector<8x36xf32> -> vector<8x36xf32>
    %171 = vector.extract_strided_slice %170 {offsets = [0, 32], sizes = [8, 1], strides = [1, 1]} : vector<8x36xf32> to vector<8x1xf32>
    %cst_51 = arith.constant 9.99999993E-9 : f32
    %172 = vector.broadcast %cst_51 : f32 to vector<8x1xf32>
    %173 = arith.addf %171, %172 : vector<8x1xf32>
    %174 = tpu.reciprocal %173 {approx = true} : vector<8x1xf32> -> vector<8x1xf32>
    %175 = vector.extract_strided_slice %170 {offsets = [0, 0], sizes = [8, 32], strides = [1, 1]} : vector<8x36xf32> to vector<8x32xf32>
    %176 = vector.broadcast %174 : vector<8x1xf32> to vector<8x32xf32>
    %177 = arith.mulf %175, %176 : vector<8x32xf32>
    %c5_i32 = arith.constant 5 : i32
    %178 = arith.truncf %177 : vector<8x32xf32> to vector<8x32xbf16>
    %cst_52 = arith.constant dense<0.000000e+00> : vector<8x64xf32>
    %179 = tpu.matmul %178, %7, %cst_52 {dimension_numbers = #tpu.dot_dimension_numbers<[1], [0], [0], [1], [0, 0, 1, 1], [], []>} : vector<8x32xbf16>, vector<32x64xbf16>, vector<8x64xf32> -> vector<8x64xf32>
    %180 = arith.mulf %177, %177 : vector<8x32xf32>
    %cst_53 = arith.constant dense<0.000000e+00> : vector<8xf32>
    %181 = vector.multi_reduction <add>, %180, %cst_53 [1] : vector<8x32xf32> to vector<8xf32>
    %182 = vector.shape_cast %181 : vector<8xf32> to vector<8x1xf32>
    %cst_54 = arith.constant 2.000000e+00 : f32
    %183 = vector.broadcast %cst_54 : f32 to vector<8x64xf32>
    %184 = arith.mulf %183, %179 : vector<8x64xf32>
    %185 = vector.broadcast %182 : vector<8x1xf32> to vector<8x64xf32>
    %186 = arith.subf %184, %185 : vector<8x64xf32>
    %cst_55 = arith.constant 1.000000e+00 : f32
    %187 = vector.broadcast %cst_55 : f32 to vector<8x64xf32>
    %188 = arith.mulf %186, %187 : vector<8x64xf32>
    %cst_56 = arith.constant dense<0xFF800000> : vector<64xf32>
    %189 = vector.multi_reduction <maximumf>, %188, %cst_56 [0] : vector<8x64xf32> to vector<64xf32>
    %190 = vector.shape_cast %189 : vector<64xf32> to vector<1x64xf32>
    %191 = vector.broadcast %190 : vector<1x64xf32> to vector<8x64xf32>
    %192 = arith.subf %188, %191 : vector<8x64xf32>
    %193 = math.exp %192 : vector<8x64xf32>
    %cst_57 = arith.constant dense<0.000000e+00> : vector<64xf32>
    %194 = vector.multi_reduction <add>, %193, %cst_57 [0] : vector<8x64xf32> to vector<64xf32>
    %195 = vector.shape_cast %194 : vector<64xf32> to vector<1x64xf32>
    %cst_58 = arith.constant 9.99999993E-9 : f32
    %196 = vector.broadcast %cst_58 : f32 to vector<1x64xf32>
    %197 = arith.addf %195, %196 : vector<1x64xf32>
    %198 = tpu.reciprocal %197 {approx = true} : vector<1x64xf32> -> vector<1x64xf32>
    %199 = vector.broadcast %198 : vector<1x64xf32> to vector<8x64xf32>
    %200 = arith.mulf %193, %199 : vector<8x64xf32>
    %201 = vector.broadcast %3 : vector<1x64xf32> to vector<8x64xf32>
    %202 = arith.mulf %200, %201 : vector<8x64xf32>
    %203 = arith.truncf %202 : vector<8x64xf32> to vector<8x64xbf16>
    %cst_59 = arith.constant dense<0.000000e+00> : vector<8x36xf32>
    %204 = tpu.matmul %203, %6, %cst_59 {dimension_numbers = #tpu.dot_dimension_numbers<[1], [1], [0], [0], [0, 0, 1, 0], [], []>} : vector<8x64xbf16>, vector<36x64xbf16>, vector<8x36xf32> -> vector<8x36xf32>
    %205 = vector.extract_strided_slice %204 {offsets = [0, 32], sizes = [8, 1], strides = [1, 1]} : vector<8x36xf32> to vector<8x1xf32>
    %cst_60 = arith.constant 9.99999993E-9 : f32
    %206 = vector.broadcast %cst_60 : f32 to vector<8x1xf32>
    %207 = arith.addf %205, %206 : vector<8x1xf32>
    %208 = tpu.reciprocal %207 {approx = true} : vector<8x1xf32> -> vector<8x1xf32>
    %209 = vector.extract_strided_slice %204 {offsets = [0, 0], sizes = [8, 32], strides = [1, 1]} : vector<8x36xf32> to vector<8x32xf32>
    %210 = vector.broadcast %208 : vector<8x1xf32> to vector<8x32xf32>
    %211 = arith.mulf %209, %210 : vector<8x32xf32>
    %c6_i32 = arith.constant 6 : i32
    %212 = arith.truncf %211 : vector<8x32xf32> to vector<8x32xbf16>
    %cst_61 = arith.constant dense<0.000000e+00> : vector<8x64xf32>
    %213 = tpu.matmul %212, %7, %cst_61 {dimension_numbers = #tpu.dot_dimension_numbers<[1], [0], [0], [1], [0, 0, 1, 1], [], []>} : vector<8x32xbf16>, vector<32x64xbf16>, vector<8x64xf32> -> vector<8x64xf32>
    %214 = arith.mulf %211, %211 : vector<8x32xf32>
    %cst_62 = arith.constant dense<0.000000e+00> : vector<8xf32>
    %215 = vector.multi_reduction <add>, %214, %cst_62 [1] : vector<8x32xf32> to vector<8xf32>
    %216 = vector.shape_cast %215 : vector<8xf32> to vector<8x1xf32>
    %cst_63 = arith.constant 2.000000e+00 : f32
    %217 = vector.broadcast %cst_63 : f32 to vector<8x64xf32>
    %218 = arith.mulf %217, %213 : vector<8x64xf32>
    %219 = vector.broadcast %216 : vector<8x1xf32> to vector<8x64xf32>
    %220 = arith.subf %218, %219 : vector<8x64xf32>
    %cst_64 = arith.constant 1.000000e+00 : f32
    %221 = vector.broadcast %cst_64 : f32 to vector<8x64xf32>
    %222 = arith.mulf %220, %221 : vector<8x64xf32>
    %cst_65 = arith.constant dense<0xFF800000> : vector<64xf32>
    %223 = vector.multi_reduction <maximumf>, %222, %cst_65 [0] : vector<8x64xf32> to vector<64xf32>
    %224 = vector.shape_cast %223 : vector<64xf32> to vector<1x64xf32>
    %225 = vector.broadcast %224 : vector<1x64xf32> to vector<8x64xf32>
    %226 = arith.subf %222, %225 : vector<8x64xf32>
    %227 = math.exp %226 : vector<8x64xf32>
    %cst_66 = arith.constant dense<0.000000e+00> : vector<64xf32>
    %228 = vector.multi_reduction <add>, %227, %cst_66 [0] : vector<8x64xf32> to vector<64xf32>
    %229 = vector.shape_cast %228 : vector<64xf32> to vector<1x64xf32>
    %cst_67 = arith.constant 9.99999993E-9 : f32
    %230 = vector.broadcast %cst_67 : f32 to vector<1x64xf32>
    %231 = arith.addf %229, %230 : vector<1x64xf32>
    %232 = tpu.reciprocal %231 {approx = true} : vector<1x64xf32> -> vector<1x64xf32>
    %233 = vector.broadcast %232 : vector<1x64xf32> to vector<8x64xf32>
    %234 = arith.mulf %227, %233 : vector<8x64xf32>
    %235 = vector.broadcast %3 : vector<1x64xf32> to vector<8x64xf32>
    %236 = arith.mulf %234, %235 : vector<8x64xf32>
    %237 = arith.truncf %236 : vector<8x64xf32> to vector<8x64xbf16>
    %cst_68 = arith.constant dense<0.000000e+00> : vector<8x36xf32>
    %238 = tpu.matmul %237, %6, %cst_68 {dimension_numbers = #tpu.dot_dimension_numbers<[1], [1], [0], [0], [0, 0, 1, 0], [], []>} : vector<8x64xbf16>, vector<36x64xbf16>, vector<8x36xf32> -> vector<8x36xf32>
    %239 = vector.extract_strided_slice %238 {offsets = [0, 32], sizes = [8, 1], strides = [1, 1]} : vector<8x36xf32> to vector<8x1xf32>
    %cst_69 = arith.constant 9.99999993E-9 : f32
    %240 = vector.broadcast %cst_69 : f32 to vector<8x1xf32>
    %241 = arith.addf %239, %240 : vector<8x1xf32>
    %242 = tpu.reciprocal %241 {approx = true} : vector<8x1xf32> -> vector<8x1xf32>
    %243 = vector.extract_strided_slice %238 {offsets = [0, 0], sizes = [8, 32], strides = [1, 1]} : vector<8x36xf32> to vector<8x32xf32>
    %244 = vector.broadcast %242 : vector<8x1xf32> to vector<8x32xf32>
    %245 = arith.mulf %243, %244 : vector<8x32xf32>
    %c7_i32 = arith.constant 7 : i32
    %246 = arith.truncf %245 : vector<8x32xf32> to vector<8x32xbf16>
    %cst_70 = arith.constant dense<0.000000e+00> : vector<8x64xf32>
    %247 = tpu.matmul %246, %7, %cst_70 {dimension_numbers = #tpu.dot_dimension_numbers<[1], [0], [0], [1], [0, 0, 1, 1], [], []>} : vector<8x32xbf16>, vector<32x64xbf16>, vector<8x64xf32> -> vector<8x64xf32>
    %248 = arith.mulf %245, %245 : vector<8x32xf32>
    %cst_71 = arith.constant dense<0.000000e+00> : vector<8xf32>
    %249 = vector.multi_reduction <add>, %248, %cst_71 [1] : vector<8x32xf32> to vector<8xf32>
    %250 = vector.shape_cast %249 : vector<8xf32> to vector<8x1xf32>
    %cst_72 = arith.constant 2.000000e+00 : f32
    %251 = vector.broadcast %cst_72 : f32 to vector<8x64xf32>
    %252 = arith.mulf %251, %247 : vector<8x64xf32>
    %253 = vector.broadcast %250 : vector<8x1xf32> to vector<8x64xf32>
    %254 = arith.subf %252, %253 : vector<8x64xf32>
    %cst_73 = arith.constant 1.000000e+00 : f32
    %255 = vector.broadcast %cst_73 : f32 to vector<8x64xf32>
    %256 = arith.mulf %254, %255 : vector<8x64xf32>
    %cst_74 = arith.constant dense<0xFF800000> : vector<64xf32>
    %257 = vector.multi_reduction <maximumf>, %256, %cst_74 [0] : vector<8x64xf32> to vector<64xf32>
    %258 = vector.shape_cast %257 : vector<64xf32> to vector<1x64xf32>
    %259 = vector.broadcast %258 : vector<1x64xf32> to vector<8x64xf32>
    %260 = arith.subf %256, %259 : vector<8x64xf32>
    %261 = math.exp %260 : vector<8x64xf32>
    %cst_75 = arith.constant dense<0.000000e+00> : vector<64xf32>
    %262 = vector.multi_reduction <add>, %261, %cst_75 [0] : vector<8x64xf32> to vector<64xf32>
    %263 = vector.shape_cast %262 : vector<64xf32> to vector<1x64xf32>
    %cst_76 = arith.constant 9.99999993E-9 : f32
    %264 = vector.broadcast %cst_76 : f32 to vector<1x64xf32>
    %265 = arith.addf %263, %264 : vector<1x64xf32>
    %266 = tpu.reciprocal %265 {approx = true} : vector<1x64xf32> -> vector<1x64xf32>
    %267 = vector.broadcast %266 : vector<1x64xf32> to vector<8x64xf32>
    %268 = arith.mulf %261, %267 : vector<8x64xf32>
    %269 = vector.broadcast %3 : vector<1x64xf32> to vector<8x64xf32>
    %270 = arith.mulf %268, %269 : vector<8x64xf32>
    %271 = arith.truncf %270 : vector<8x64xf32> to vector<8x64xbf16>
    %cst_77 = arith.constant dense<0.000000e+00> : vector<8x36xf32>
    %272 = tpu.matmul %271, %6, %cst_77 {dimension_numbers = #tpu.dot_dimension_numbers<[1], [1], [0], [0], [0, 0, 1, 0], [], []>} : vector<8x64xbf16>, vector<36x64xbf16>, vector<8x36xf32> -> vector<8x36xf32>
    %273 = vector.extract_strided_slice %272 {offsets = [0, 32], sizes = [8, 1], strides = [1, 1]} : vector<8x36xf32> to vector<8x1xf32>
    %cst_78 = arith.constant 9.99999993E-9 : f32
    %274 = vector.broadcast %cst_78 : f32 to vector<8x1xf32>
    %275 = arith.addf %273, %274 : vector<8x1xf32>
    %276 = tpu.reciprocal %275 {approx = true} : vector<8x1xf32> -> vector<8x1xf32>
    %277 = vector.extract_strided_slice %272 {offsets = [0, 0], sizes = [8, 32], strides = [1, 1]} : vector<8x36xf32> to vector<8x32xf32>
    %278 = vector.broadcast %276 : vector<8x1xf32> to vector<8x32xf32>
    %279 = arith.mulf %277, %278 : vector<8x32xf32>
    %c8_i32 = arith.constant 8 : i32
    %280 = arith.truncf %279 : vector<8x32xf32> to vector<8x32xbf16>
    %cst_79 = arith.constant dense<0.000000e+00> : vector<8x64xf32>
    %281 = tpu.matmul %280, %7, %cst_79 {dimension_numbers = #tpu.dot_dimension_numbers<[1], [0], [0], [1], [0, 0, 1, 1], [], []>} : vector<8x32xbf16>, vector<32x64xbf16>, vector<8x64xf32> -> vector<8x64xf32>
    %282 = arith.mulf %279, %279 : vector<8x32xf32>
    %cst_80 = arith.constant dense<0.000000e+00> : vector<8xf32>
    %283 = vector.multi_reduction <add>, %282, %cst_80 [1] : vector<8x32xf32> to vector<8xf32>
    %284 = vector.shape_cast %283 : vector<8xf32> to vector<8x1xf32>
    %cst_81 = arith.constant 2.000000e+00 : f32
    %285 = vector.broadcast %cst_81 : f32 to vector<8x64xf32>
    %286 = arith.mulf %285, %281 : vector<8x64xf32>
    %287 = vector.broadcast %284 : vector<8x1xf32> to vector<8x64xf32>
    %288 = arith.subf %286, %287 : vector<8x64xf32>
    %cst_82 = arith.constant 1.000000e+00 : f32
    %289 = vector.broadcast %cst_82 : f32 to vector<8x64xf32>
    %290 = arith.mulf %288, %289 : vector<8x64xf32>
    %cst_83 = arith.constant dense<0xFF800000> : vector<64xf32>
    %291 = vector.multi_reduction <maximumf>, %290, %cst_83 [0] : vector<8x64xf32> to vector<64xf32>
    %292 = vector.shape_cast %291 : vector<64xf32> to vector<1x64xf32>
    %293 = vector.broadcast %292 : vector<1x64xf32> to vector<8x64xf32>
    %294 = arith.subf %290, %293 : vector<8x64xf32>
    %295 = math.exp %294 : vector<8x64xf32>
    %cst_84 = arith.constant dense<0.000000e+00> : vector<64xf32>
    %296 = vector.multi_reduction <add>, %295, %cst_84 [0] : vector<8x64xf32> to vector<64xf32>
    %297 = vector.shape_cast %296 : vector<64xf32> to vector<1x64xf32>
    %cst_85 = arith.constant 9.99999993E-9 : f32
    %298 = vector.broadcast %cst_85 : f32 to vector<1x64xf32>
    %299 = arith.addf %297, %298 : vector<1x64xf32>
    %300 = tpu.reciprocal %299 {approx = true} : vector<1x64xf32> -> vector<1x64xf32>
    %301 = vector.broadcast %300 : vector<1x64xf32> to vector<8x64xf32>
    %302 = arith.mulf %295, %301 : vector<8x64xf32>
    %303 = vector.broadcast %3 : vector<1x64xf32> to vector<8x64xf32>
    %304 = arith.mulf %302, %303 : vector<8x64xf32>
    %305 = arith.truncf %304 : vector<8x64xf32> to vector<8x64xbf16>
    %cst_86 = arith.constant dense<0.000000e+00> : vector<8x36xf32>
    %306 = tpu.matmul %305, %6, %cst_86 {dimension_numbers = #tpu.dot_dimension_numbers<[1], [1], [0], [0], [0, 0, 1, 0], [], []>} : vector<8x64xbf16>, vector<36x64xbf16>, vector<8x36xf32> -> vector<8x36xf32>
    %307 = vector.extract_strided_slice %306 {offsets = [0, 32], sizes = [8, 1], strides = [1, 1]} : vector<8x36xf32> to vector<8x1xf32>
    %cst_87 = arith.constant 9.99999993E-9 : f32
    %308 = vector.broadcast %cst_87 : f32 to vector<8x1xf32>
    %309 = arith.addf %307, %308 : vector<8x1xf32>
    %310 = tpu.reciprocal %309 {approx = true} : vector<8x1xf32> -> vector<8x1xf32>
    %311 = vector.extract_strided_slice %306 {offsets = [0, 0], sizes = [8, 32], strides = [1, 1]} : vector<8x36xf32> to vector<8x32xf32>
    %312 = vector.broadcast %310 : vector<8x1xf32> to vector<8x32xf32>
    %313 = arith.mulf %311, %312 : vector<8x32xf32>
    %314 = arith.truncf %313 : vector<8x32xf32> to vector<8x32xbf16>
    %cst_88 = arith.constant dense<0.000000e+00> : vector<8x64xf32>
    %315 = tpu.matmul %314, %7, %cst_88 {dimension_numbers = #tpu.dot_dimension_numbers<[1], [0], [0], [1], [0, 0, 1, 1], [], []>} : vector<8x32xbf16>, vector<32x64xbf16>, vector<8x64xf32> -> vector<8x64xf32>
    %316 = arith.mulf %313, %313 : vector<8x32xf32>
    %cst_89 = arith.constant dense<0.000000e+00> : vector<8xf32>
    %317 = vector.multi_reduction <add>, %316, %cst_89 [1] : vector<8x32xf32> to vector<8xf32>
    %318 = vector.shape_cast %317 : vector<8xf32> to vector<8x1xf32>
    %cst_90 = arith.constant 2.000000e+00 : f32
    %319 = vector.broadcast %cst_90 : f32 to vector<8x64xf32>
    %320 = arith.mulf %319, %315 : vector<8x64xf32>
    %321 = vector.broadcast %318 : vector<8x1xf32> to vector<8x64xf32>
    %322 = arith.subf %320, %321 : vector<8x64xf32>
    %cst_91 = arith.constant 1.000000e+00 : f32
    %323 = vector.broadcast %cst_91 : f32 to vector<8x64xf32>
    %324 = arith.mulf %322, %323 : vector<8x64xf32>
    %cst_92 = arith.constant dense<0xFF800000> : vector<64xf32>
    %325 = vector.multi_reduction <maximumf>, %324, %cst_92 [0] : vector<8x64xf32> to vector<64xf32>
    %326 = vector.shape_cast %325 : vector<64xf32> to vector<1x64xf32>
    %327 = vector.broadcast %326 : vector<1x64xf32> to vector<8x64xf32>
    %328 = arith.subf %324, %327 : vector<8x64xf32>
    %329 = math.exp %328 : vector<8x64xf32>
    %cst_93 = arith.constant dense<0.000000e+00> : vector<64xf32>
    %330 = vector.multi_reduction <add>, %329, %cst_93 [0] : vector<8x64xf32> to vector<64xf32>
    %331 = vector.shape_cast %330 : vector<64xf32> to vector<1x64xf32>
    %cst_94 = arith.constant 9.99999993E-9 : f32
    %332 = vector.broadcast %cst_94 : f32 to vector<1x64xf32>
    %333 = arith.addf %331, %332 : vector<1x64xf32>
    %334 = vector.broadcast %333 : vector<1x64xf32> to vector<8x64xf32>
    %335 = arith.divf %329, %334 : vector<8x64xf32>
    %336 = vector.broadcast %3 : vector<1x64xf32> to vector<8x64xf32>
    %337 = arith.mulf %335, %336 : vector<8x64xf32>
    %cst_95 = arith.constant dense<0.000000e+00> : vector<8x36xf32>
    %338 = tpu.matmul %337, %1, %cst_95 {dimension_numbers = #tpu.dot_dimension_numbers<[1], [1], [0], [0], [0, 0, 1, 0], [], []>} : vector<8x64xf32>, vector<36x64xf32>, vector<8x36xf32> -> vector<8x36xf32>
    %339 = vector.extract_strided_slice %338 {offsets = [0, 32], sizes = [8, 1], strides = [1, 1]} : vector<8x36xf32> to vector<8x1xf32>
    %340 = vector.extract_strided_slice %338 {offsets = [0, 0], sizes = [8, 32], strides = [1, 1]} : vector<8x36xf32> to vector<8x32xf32>
    %cst_96 = arith.constant 9.99999993E-9 : f32
    %341 = vector.broadcast %cst_96 : f32 to vector<8x1xf32>
    %342 = arith.addf %339, %341 : vector<8x1xf32>
    %343 = vector.broadcast %342 : vector<8x1xf32> to vector<8x32xf32>
    %344 = arith.divf %340, %343 : vector<8x32xf32>
    %345 = vector.extract_strided_slice %338 {offsets = [0, 33], sizes = [8, 3], strides = [1, 1]} : vector<8x36xf32> to vector<8x3xf32>
    %cst_97 = arith.constant 9.99999993E-9 : f32
    %346 = vector.broadcast %cst_97 : f32 to vector<8x1xf32>
    %347 = arith.addf %339, %346 : vector<8x1xf32>
    %348 = vector.broadcast %347 : vector<8x1xf32> to vector<8x3xf32>
    %349 = arith.divf %345, %348 : vector<8x3xf32>
    %350 = vector.shape_cast %339 : vector<8x1xf32> to vector<1x8x1xf32>
    %cst_98 = arith.constant dense<0.000000e+00> : vector<1xf32>
    %351 = vector.multi_reduction <add>, %350, %cst_98 [1, 2] : vector<1x8x1xf32> to vector<1xf32>
    %352 = vector.shape_cast %351 : vector<1xf32> to vector<1x1x1xf32>
    %353 = vector.extract %352[0, 0, 0] : f32 from vector<1x1x1xf32>
    %cst_99 = arith.constant 9.99999993E-9 : f32
    %354 = arith.addf %353, %cst_99 : f32
    %355 = vector.broadcast %354 : f32 to vector<8x1xf32>
    %356 = arith.divf %339, %355 : vector<8x1xf32>
    %c0_100 = arith.constant 0 : index
    %c0_101 = arith.constant 0 : index
    %c0_102 = arith.constant 0 : index
    %357 = vector.load %arg4[%c0_100, %c0_101, %c0_102] : memref<1x8x64xf32, #tpu.memory_space<vmem>>, vector<1x8x64xf32>
    %358 = vector.shape_cast %357 : vector<1x8x64xf32> to vector<8x64xf32>
    %359 = vector.shape_cast %335 : vector<8x64xf32> to vector<1x8x64xf32>
    tpu.vector_store %arg4[%c0_100, %c0_101, %c0_102], %359 {strides = array<i32>} : memref<1x8x64xf32, #tpu.memory_space<vmem>>, vector<1x8x64xf32>,
    %c0_103 = arith.constant 0 : index
    %c0_104 = arith.constant 0 : index
    %c0_105 = arith.constant 0 : index
    %360 = vector.load %arg5[%c0_103, %c0_104, %c0_105] : memref<1x8x1xf32, #tpu.memory_space<vmem>>, vector<1x8x1xf32>
    %361 = vector.shape_cast %360 : vector<1x8x1xf32> to vector<8x1xf32>
    %362 = vector.shape_cast %356 : vector<8x1xf32> to vector<1x8x1xf32>
    tpu.vector_store %arg5[%c0_103, %c0_104, %c0_105], %362 {strides = array<i32>} : memref<1x8x1xf32, #tpu.memory_space<vmem>>, vector<1x8x1xf32>,
    %c0_106 = arith.constant 0 : index
    %c0_107 = arith.constant 0 : index
    %c0_108 = arith.constant 0 : index
    %363 = vector.load %arg6[%c0_106, %c0_107, %c0_108] : memref<1x8x3xf32, #tpu.memory_space<vmem>>, vector<1x8x3xf32>
    %364 = vector.shape_cast %363 : vector<1x8x3xf32> to vector<8x3xf32>
    %365 = vector.shape_cast %349 : vector<8x3xf32> to vector<1x8x3xf32>
    tpu.vector_store %arg6[%c0_106, %c0_107, %c0_108], %365 {strides = array<i32>} : memref<1x8x3xf32, #tpu.memory_space<vmem>>, vector<1x8x3xf32>,
    %c0_109 = arith.constant 0 : index
    %c0_110 = arith.constant 0 : index
    %c0_111 = arith.constant 0 : index
    %366 = vector.load %arg7[%c0_109, %c0_110, %c0_111] : memref<1x8x32xf32, #tpu.memory_space<vmem>>, vector<1x8x32xf32>
    %367 = vector.shape_cast %366 : vector<1x8x32xf32> to vector<8x32xf32>
    %368 = vector.shape_cast %344 : vector<8x32xf32> to vector<1x8x32xf32>
    tpu.vector_store %arg7[%c0_109, %c0_110, %c0_111], %368 {strides = array<i32>} : memref<1x8x32xf32, #tpu.memory_space<vmem>>, vector<1x8x32xf32>,
    return
  }
  func.func @transform_0(%arg0: i32) -> (i32, i32, i32) {
    %c0_i32 = arith.constant 0 : i32
    %c0_i32_0 = arith.constant 0 : i32
    %c0_i32_1 = arith.constant 0 : i32
    return %arg0, %c0_i32, %c0_i32_0 : i32, i32, i32
  }
  func.func @transform_1(%arg0: i32) -> (i32, i32, i32) {
    %c0_i32 = arith.constant 0 : i32
    %c0_i32_0 = arith.constant 0 : i32
    %c0_i32_1 = arith.constant 0 : i32
    return %arg0, %c0_i32, %c0_i32_0 : i32, i32, i32
  }
  func.func @transform_2(%arg0: i32) -> (i32, i32, i32) {
    %c0_i32 = arith.constant 0 : i32
    %c0_i32_0 = arith.constant 0 : i32
    %c0_i32_1 = arith.constant 0 : i32
    return %arg0, %c0_i32, %c0_i32_0 : i32, i32, i32
  }
  func.func @transform_3(%arg0: i32) -> (i32, i32, i32) {
    %c0_i32 = arith.constant 0 : i32
    %c0_i32_0 = arith.constant 0 : i32
    %c0_i32_1 = arith.constant 0 : i32
    return %arg0, %c0_i32, %c0_i32_0 : i32, i32, i32
  }
  func.func @transform_4(%arg0: i32) -> (i32, i32, i32) {
    %c0_i32 = arith.constant 0 : i32
    %c0_i32_0 = arith.constant 0 : i32
    %c0_i32_1 = arith.constant 0 : i32
    return %arg0, %c0_i32, %c0_i32_0 : i32, i32, i32
  }
  func.func @transform_5(%arg0: i32) -> (i32, i32, i32) {
    %c0_i32 = arith.constant 0 : i32
    %c0_i32_0 = arith.constant 0 : i32
    %c0_i32_1 = arith.constant 0 : i32
    return %arg0, %c0_i32, %c0_i32_0 : i32, i32, i32
  }
  func.func @transform_6(%arg0: i32) -> (i32, i32, i32) {
    %c0_i32 = arith.constant 0 : i32
    %c0_i32_0 = arith.constant 0 : i32
    %c0_i32_1 = arith.constant 0 : i32
    return %arg0, %c0_i32, %c0_i32_0 : i32, i32, i32
  }
}

</mosaic_0001>

<bundles_post_ra>
// kernel: tpu_custom_call.1
= control target key start
LH: loop header
LB: loop body
LE: loop exit
PB: predicated region body
PF: predicated region fallthrough
CT: control target
= control target key end

     0   :  { %s2798_s0 = inlined_call_operand.vmem [shape: f32[2,36,64], index: 0, kind: input, shape index: {}]   ;;  %s2799_s1 = inlined_call_operand.vmem [shape: f32[2,1,64], index: 1, kind: input, shape index: {}]   ;;  %s2800_s2 = inlined_call_operand.vmem [shape: f32[2,8,32], index: 2, kind: input, shape index: {}]   ;;  %s2801_s3 = inlined_call_operand.hbm [shape: f32[2,8,64], index: 3, kind: output, shape index: {0}]   ;;  %s2802_s4 = inlined_call_operand.vmem [shape: f32[2,8,1], index: 4, kind: output, shape index: {1}]   ;;  %s2803_s5 = inlined_call_operand.vmem [shape: f32[2,8,3], index: 5, kind: output, shape index: {2}]   ;;  %s2804_s6 = inlined_call_operand.hbm [shape: f32[2,8,32], index: 6, kind: output, shape index: {3}]  }
   0x1   :  { %2807 = sst [smem:[#allocation8_spill]] %s2798_s0 }
   0x2   :  { %12 = vsyncpa [#allocation3], 0 }
   0x3   :  { %14 = vsyncpa [#allocation3 + $0x1], 0 }
   0x4   :  { %15 = vsyncpa [#allocation5], 0 }
   0x5   :  { %17 = vsyncpa [#allocation5 + $0x1], 0  ;;  %s2405_s21 = smov 0   ;;  %s2407_s22 = smov 0  }
   0x6   :  { %s2409_s23 = smov 0   ;;  %s2411_s24 = smov 0  }
   0x7 LB: > { %s2426_s25 = sadd.s32 4294967295, %s2361_s24   ;;  %s1852_s26 = sadd.s32 4294967294, %s2361_s24   ;;  %s2361_s24 = sphi %s2411_s24, %s2816_s24   ;;  %s2357_s23 = sphi %s2409_s23, %s2815_s23   ;;  %s2353_s22 = sphi %s2407_s22, %s2814_s22   ;;  %s2349_s21 = sphi %s2405_s21, %s2813_s21  }
   0x8   : > { %s2430_s27 = sadd.s32 1, %s2361_s24   ;;  %s108_s28 = sadd.s32 1, %s2357_s23 }
   0x9   : > { %s105_s29 = ssub.s32 %s2361_s24, %s2430_s27  ;;  %p118_p0 = scmp.ne.s32.totalorder %s2357_s23, %s2353_s22 }
   0xa   : > { %p106_p1 = scmp.eq.s32.totalorder %s105_s29, 0  ;;  %p119_p2 = scmp.eq.s32.totalorder %s2426_s25, 1 }
   0xb   : > { %p124_p3 = scmp.ne.s32.totalorder %s2353_s22, %s2349_s21  ;;  %p125_p4 = scmp.eq.s32.totalorder %s1852_s26, 1 }
   0xc   : > { %s2441_s30 = scalar_select %p106_p1, %s2357_s23, %s108_s28  }
   0xd   : > { %p2443_p5 = por %p119_p2, %p118_p0  ;;  %p2447_p6 = por %p125_p4, %p124_p3 }
   0xe   : > { %p1855_p7 = scmp.ge.s32.totalorder %s2361_s24, 1  ;;  %p242_p8 = scmp.lt.s32.totalorder %s2361_s24, 3 }
  0x10   : > { %p243_p9 = pnand %p1855_p7, %p242_p8 }
  0x11   : > { %p292_p10 = scmp.lt.s32.totalorder (!%p243_p9), %s2426_s25, 1  ;;  %s2810_s0 = sld [smem:[#allocation8_spill]] (!%p243_p9) }
  0x12   : > { %246 = sbr.rel (%p243_p9) target bundleno = 6372 (0x18e4), region = 32  ;;  %s2707_s26 = sand.u32 (!%p243_p9), 1, %s2353_s22  }
  0x13   : > { %s1856_s28 = sshll.u32 (!%p243_p9), %s2707_s26, 3  ;;  %s1647_s19 = scalar_lea.sflag (!%p243_p9), [#allocation3], %s2707_s26 }
  0x14   : > { %s2711_s29 = scalar_lea.vmem (!%p243_p9), [#allocation2], %s1856_s28 }
  0x15   : > { %s1673_s15 = sshll.u32 (!%p243_p9), %s2711_s29, 4  ;;  %s1674_s15 = int_to_ptr.vmem [resolvable:$true] %s1673_s15 }
  0x17   : > { %v2363_v0 = vmov 0.0   ;;  %vm2364_vm0 = vmmov 0   ;;  %s2458_s9 = scalar_select %p292_p10, %s2426_s25, 1  ;;  %vm324_vm1 = vcmask 261120   ;;  %vm374_vm2 = vcmask 523264  }
  0x18   : > { %1966 = vmatprep.subr.bf16.mxu0 %v2363_v0  ;;  %1970 = vmatprep.mubr.msk.bf16.mxu0 %vm2364_vm0, %v2363_v0  ;;  %v2365_v46 = vmov 32   ;;  %vm1618_vm3 = vcmask 7168  }
  0x19   : > { %1974 = vmatprep.subr.bf16.mxu1 %v2363_v0  ;;  %1980 = vmatprep.mubr.msk.bf16.mxu1 %vm2364_vm0, %v2363_v0  ;;  %s2149_s10 = smul.u32 40, %s2458_s9  ;;  %s2465_s11 = sshll.u32 %s2458_s9, 3 }
  0x1a   : > { %s303_s14 = scalar_lea.vmem %s2800_s2, %s2465_s11  ;;  %s2520_s20 = scalar_lea.vmem %s2799_s1, %s2458_s9  ;;  %2201 = vset.pattern.permute.xlu0 %v2365_v46  ;;  %2202 = vset.pattern.permute.xlu1 %v2365_v46 }
  0x1b   : > { %s2474_s17 = scalar_lea.vmem %s2810_s0, %s2149_s10  ;;  %v319_v1 = vld [vmem:[%s303_s14] sm:$0xff]  ;;  %s2805_s9 = smov 96  }
  0x1c   : > { %v315_v2 = vld [vmem:[%s2474_s17 + $0x10] sm:$0xff]  ;;  %v316_v3 = vld [vmem:[%s2474_s17 + $0x18] sm:$0xff]  ;;  %v313_v4 = vld [vmem:[%s2474_s17] sm:$0xff]  ;;  %v368_v5 = vmul.f32 %v319_v1, %v319_v1  ;;  %v323_v10 = vpack.c.bf16 %v319_v1, %v319_v1  ;;  %s2725_s10 = scalar_lea.vmem [#allocation4], %s1856_s28  ;;  %s2806_s14 = sshll.u32 %s2426_s25, 7 }
  0x1d   : > { %v2479_v6 = vpack.c.bf16 %v316_v3, %v315_v2  ;;  %v314_v7 = vld [vmem:[%s2474_s17 + $0x8] sm:$0xff]  ;;  %v317_v11 = vld [vmem:[%s2474_s17 + $0x20] sm:$0xf]  ;;  %s1671_s18 = scalar_lea.hbm %s2801_s3, %s2806_s14  ;;  %s2367_s28 = smov [#allocation2]  }
  0x1e   : > { %v369_v8 = vsel %vm324_vm1, %v368_v5, 0.0  ;;  %v2484_v9 = vpack.c.bf16 %v314_v7, %v313_v4  ;;  %v322_v12 = vpack.c.bf16 %v317_v11, %v317_v11  ;;  %v2523_v42 = vld [vmem:[%s2520_s20] ss:$0 sm:$0xff] }
  0x1f   : > { %1967 = vmatpush3.bf16.msra.mxu0 %v2479_v6  ;;  %370 = vadd.xlane.f32.xlu0 %v369_v8  ;;  %v2504_v14 = vsel %vm374_vm2, %v2479_v6, 0 }
  0x20   : > { %1968 = vmatprep.subr.bf16.mxu0 %v2363_v0  ;;  %v2498_v13 = vsel %vm374_vm2, %v322_v12, 0  ;;  %v2510_v15 = vsel %vm374_vm2, %v2484_v9, 0 }
  0x21   : > { %1975 = vmatpush3.bf16.xpose.msra.mxu1 %v2498_v13 }
  0x22   : > { %1976 = vmatprep.subr.bf16.mxu1 %v2363_v0 }
  0x23   : > { %1969 = vmatpush3.bf16.msra.mxu0 %v2484_v9 }
  0x24   : > { %1984 = vmatprep.subr.bf16.mxu0 %v2363_v0 }
  0x26   : > { %1971 = vmatmul.mubr.msk.bf16.vlgmr.msra.gmra.mxu0 %vm324_vm1, %v323_v10 }
  0x27   : > { %1985 = vmatpush3.bf16.msra.mxu0 %v2479_v6  ;;  %1988 = vmatprep.mubr.msk.bf16.mxu0 %vm2364_vm0, %v2363_v0 }
  0x28   : > { %1986 = vmatprep.subr.bf16.mxu0 %v2363_v0 }
  0x29   : > { %1977 = vmatpush3.bf16.xpose.msra.mxu1 %v2504_v14 }
  0x2a   : > { %1978 = vmatprep.subr.bf16.mxu1 %v2363_v0 }
  0x2b   : > { %1987 = vmatpush3.bf16.msra.mxu0 %v2484_v9 }
  0x2c   : > { %1992 = vmatprep.subr.bf16.mxu0 %v2363_v0 }
  0x31   : > { %1979 = vmatpush3.bf16.xpose.msra.mxu1 %v2510_v15 }
  0x32   : > { %2002 = vmatprep.subr.bf16.mxu1 %v2363_v0 }
  0xa8   : > { %v371_v17 = vpop.xlane.xlu0 %370 }
  0xe6   : > { %v362_v16 = vpop.f32.mrf.mxu0 }
  0xe7   : > { %v372_v18 = vmul.f32 2.0, %v362_v16 }
  0xe8   : > { %v1972_v19 = vpop.f32.mrf.mxu0 }
  0xe9   : > { %v373_v20 = vsub.f32 %v372_v18, %v371_v17 }
  0xea   : > { %v365_v21 = vpop.f32.mrf.mxu0 }
  0xeb   : > { %v375_v22 = vsel %vm374_vm2, %v373_v20, -inf }
  0xec   : > { %v376_v23 = vrot.slane %v375_v22, 4  ;;  %v1973_v24 = vpop.f32.mrf.mxu0 }
  0xee   : > { %v377_v25 = vmax.f32 %v375_v22, %v376_v23 }
  0xf0   : > { %v378_v26 = vrot.slane %v377_v25, 2 }
  0xf2   : > { %v379_v27 = vmax.f32 %v377_v25, %v378_v26 }
  0xf4   : > { %v380_v28 = vrot.slane %v379_v27, 1 }
  0xf6   : > { %v381_v29 = vmax.f32 %v379_v27, %v380_v28 }
  0xf8   : > { %v382_v30 = vsub.f32 %v373_v20, %v381_v29 }
  0xfa   : > { %v383_v31 = vmul.f32 1.442695, %v382_v30 }
  0xfc   : > { %2203 = vpow2.f32 %v383_v31 }
 0x109   : > { %v2204_v32 = vpop.eup %2203 }
 0x10a   : > { %v385_v33 = vsel %vm374_vm2, %v2204_v32, 0.0 }
 0x10b   : > { %v386_v34 = vrot.slane %v385_v33, 4 }
 0x10d   : > { %v387_v35 = vadd.f32 %v386_v34, %v385_v33 }
 0x10f   : > { %v388_v36 = vrot.slane %v387_v35, 2 }
 0x111   : > { %v389_v37 = vadd.f32 %v388_v36, %v387_v35 }
 0x113   : > { %v390_v38 = vrot.slane %v389_v37, 1 }
 0x115   : > { %v391_v39 = vadd.f32 %v390_v38, %v389_v37 }
 0x117   : > { %v392_v40 = vadd.f32 1e-08, %v391_v39 }
 0x119   : > { %2205 = vrcp.f32 %v392_v40 }
 0x126   : > { %v2206_v41 = vpop.eup %2205 }
 0x127   : > { %v394_v43 = vmul.f32 %v2206_v41, %v2204_v32 }
 0x129   : > { %v401_v44 = vmul.f32 %v2523_v42, %v394_v43 }
 0x12b   : > { %v402_v45 = vpack.c.bf16 %v401_v44, %v401_v44 }
 0x12d   : > { %1981 = vmatmul.mubr.msk.bf16.vlgmr.msra.gmra.mxu1 %vm374_vm2, %v402_v45 }
 0x12e   : > { %2003 = vmatpush3.bf16.msra.mxu1 %v2479_v6  ;;  %2006 = vmatprep.mubr.msk.bf16.mxu1 %vm2364_vm0, %v2363_v0 }
 0x12f   : > { %2004 = vmatprep.subr.bf16.mxu1 %v2363_v0 }
 0x132   : > { %2005 = vmatpush3.bf16.msra.mxu1 %v2484_v9 }
 0x133   : > { %2010 = vmatprep.subr.bf16.mxu1 %v2363_v0 }
 0x1ed   : > { %v449_v47 = vpop.f32.mrf.mxu1 }
 0x1ee   : > { %v455_v48 = vadd.f32 1e-08, %v449_v47 }
 0x1ef   : > { %v1982_v49 = vpop.f32.mrf.mxu1 }
 0x1f0   : > { %2207 = vrcp.f32 %v455_v48 }
 0x1f1   : > { %v452_v50 = vpop.f32.mrf.mxu1 }
 0x1f3   : > { %v1983_v51 = vpop.f32.mrf.mxu1 }
 0x1fd   : > { %v2208_v52 = vpop.eup %2207 }
 0x1fe   : > { %459 = vperm.xlu0 %2201, %v2208_v52  }
 0x279   : > { %v460_v53 = vpop.permute.xlu0 %459 }
 0x27a   : > { %v462_v54 = vmul.f32 %v460_v53, %v449_v47 }
 0x27c   : > { %v463_v55 = vpack.c.bf16 %v462_v54, %v462_v54  ;;  %v507_v56 = vmul.f32 %v462_v54, %v462_v54 }
 0x27e   : > { %1989 = vmatmul.mubr.msk.bf16.vlgmr.msra.gmra.mxu0 %vm324_vm1, %v463_v55  ;;  %v508_v57 = vsel %vm324_vm1, %v507_v56, 0.0 }
 0x27f   : > { %509 = vadd.xlane.f32.xlu1 %v508_v57  ;;  %1993 = vmatpush3.bf16.xpose.msra.mxu0 %v2498_v13 }
 0x280   : > { %1994 = vmatprep.subr.bf16.mxu0 %v2363_v0  ;;  %1998 = vmatprep.mubr.msk.bf16.mxu0 %vm2364_vm0, %v2363_v0 }
 0x287   : > { %1995 = vmatpush3.bf16.xpose.msra.mxu0 %v2504_v14 }
 0x288   : > { %1996 = vmatprep.subr.bf16.mxu0 %v2363_v0 }
 0x28f   : > { %1997 = vmatpush3.bf16.xpose.msra.mxu0 %v2510_v15 }
 0x290   : > { %2020 = vmatprep.subr.bf16.mxu0 %v2363_v0 }
 0x308   : > { %v510_v60 = vpop.xlane.xlu1 %509 }
 0x33e   : > { %v501_v58 = vpop.f32.mrf.mxu0 }
 0x33f   : > { %v511_v59 = vmul.f32 2.0, %v501_v58 }
 0x340   : > { %v1990_v61 = vpop.f32.mrf.mxu0 }
 0x341   : > { %v512_v62 = vsub.f32 %v511_v59, %v510_v60 }
 0x342   : > { %v504_v63 = vpop.f32.mrf.mxu0 }
 0x343   : > { %v513_v1 = vsel %vm374_vm2, %v512_v62, -inf }
 0x344   : > { %v514_v2 = vrot.slane %v513_v1, 4  ;;  %v1991_v3 = vpop.f32.mrf.mxu0 }
 0x346   : > { %v515_v4 = vmax.f32 %v513_v1, %v514_v2 }
 0x348   : > { %v516_v5 = vrot.slane %v515_v4, 2 }
 0x34a   : > { %v517_v7 = vmax.f32 %v515_v4, %v516_v5 }
 0x34c   : > { %v518_v8 = vrot.slane %v517_v7, 1 }
 0x34e   : > { %v519_v10 = vmax.f32 %v517_v7, %v518_v8 }
 0x350   : > { %v520_v11 = vsub.f32 %v512_v62, %v519_v10 }
 0x352   : > { %v521_v12 = vmul.f32 1.442695, %v520_v11 }
 0x354   : > { %2209 = vpow2.f32 %v521_v12 }
 0x361   : > { %v2210_v16 = vpop.eup %2209 }
 0x362   : > { %v523_v17 = vsel %vm374_vm2, %v2210_v16, 0.0 }
 0x363   : > { %v524_v18 = vrot.slane %v523_v17, 4 }
 0x365   : > { %v525_v19 = vadd.f32 %v524_v18, %v523_v17 }
 0x367   : > { %v526_v20 = vrot.slane %v525_v19, 2 }
 0x369   : > { %v527_v21 = vadd.f32 %v526_v20, %v525_v19 }
 0x36b   : > { %v528_v22 = vrot.slane %v527_v21, 1 }
 0x36d   : > { %v529_v23 = vadd.f32 %v528_v22, %v527_v21 }
 0x36f   : > { %v530_v24 = vadd.f32 1e-08, %v529_v23 }
 0x371   : > { %2211 = vrcp.f32 %v530_v24 }
 0x37e   : > { %v2212_v25 = vpop.eup %2211 }
 0x37f   : > { %v532_v26 = vmul.f32 %v2212_v25, %v2210_v16 }
 0x381   : > { %v533_v27 = vmul.f32 %v2523_v42, %v532_v26 }
 0x383   : > { %v534_v28 = vpack.c.bf16 %v533_v27, %v533_v27 }
 0x385   : > { %1999 = vmatmul.mubr.msk.bf16.vlgmr.msra.gmra.mxu0 %vm374_vm2, %v534_v28 }
 0x386   : > { %2021 = vmatpush3.bf16.msra.mxu0 %v2479_v6  ;;  %2024 = vmatprep.mubr.msk.bf16.mxu0 %vm2364_vm0, %v2363_v0 }
 0x387   : > { %2022 = vmatprep.subr.bf16.mxu0 %v2363_v0 }
 0x38a   : > { %2023 = vmatpush3.bf16.msra.mxu0 %v2484_v9 }
 0x38b   : > { %2028 = vmatprep.subr.bf16.mxu0 %v2363_v0 }
 0x445   : > { %v572_v29 = vpop.f32.mrf.mxu0 }
 0x446   : > { %v578_v30 = vadd.f32 1e-08, %v572_v29 }
 0x447   : > { %v2000_v31 = vpop.f32.mrf.mxu0 }
 0x448   : > { %2213 = vrcp.f32 %v578_v30 }
 0x449   : > { %v575_v32 = vpop.f32.mrf.mxu0 }
 0x44b   : > { %v2001_v33 = vpop.f32.mrf.mxu0 }
 0x455   : > { %v2214_v34 = vpop.eup %2213 }
 0x456   : > { %582 = vperm.xlu1 %2202, %v2214_v34  }
 0x4d1   : > { %v583_v35 = vpop.permute.xlu1 %582 }
 0x4d2   : > { %v585_v36 = vmul.f32 %v583_v35, %v572_v29 }
 0x4d4   : > { %v586_v37 = vpack.c.bf16 %v585_v36, %v585_v36  ;;  %v630_v38 = vmul.f32 %v585_v36, %v585_v36 }
 0x4d6   : > { %2007 = vmatmul.mubr.msk.bf16.vlgmr.msra.gmra.mxu1 %vm324_vm1, %v586_v37  ;;  %v631_v39 = vsel %vm324_vm1, %v630_v38, 0.0 }
 0x4d7   : > { %632 = vadd.xlane.f32.xlu1 %v631_v39  ;;  %2011 = vmatpush3.bf16.xpose.msra.mxu1 %v2498_v13 }
 0x4d8   : > { %2012 = vmatprep.subr.bf16.mxu1 %v2363_v0  ;;  %2016 = vmatprep.mubr.msk.bf16.mxu1 %vm2364_vm0, %v2363_v0 }
 0x4df   : > { %2013 = vmatpush3.bf16.xpose.msra.mxu1 %v2504_v14 }
 0x4e0   : > { %2014 = vmatprep.subr.bf16.mxu1 %v2363_v0 }
 0x4e7   : > { %2015 = vmatpush3.bf16.xpose.msra.mxu1 %v2510_v15 }
 0x4e8   : > { %2038 = vmatprep.subr.bf16.mxu1 %v2363_v0 }
 0x560   : > { %v633_v43 = vpop.xlane.xlu1 %632 }
 0x596   : > { %v624_v40 = vpop.f32.mrf.mxu1 }
 0x597   : > { %v634_v41 = vmul.f32 2.0, %v624_v40 }
 0x598   : > { %v2008_v44 = vpop.f32.mrf.mxu1 }
 0x599   : > { %v635_v45 = vsub.f32 %v634_v41, %v633_v43 }
 0x59a   : > { %v627_v46 = vpop.f32.mrf.mxu1 }
 0x59b   : > { %v636_v47 = vsel %vm374_vm2, %v635_v45, -inf }
 0x59c   : > { %v637_v48 = vrot.slane %v636_v47, 4  ;;  %v2009_v49 = vpop.f32.mrf.mxu1 }
 0x59e   : > { %v638_v50 = vmax.f32 %v636_v47, %v637_v48 }
 0x5a0   : > { %v639_v51 = vrot.slane %v638_v50, 2 }
 0x5a2   : > { %v640_v52 = vmax.f32 %v638_v50, %v639_v51 }
 0x5a4   : > { %v641_v53 = vrot.slane %v640_v52, 1 }
 0x5a6   : > { %v642_v54 = vmax.f32 %v640_v52, %v641_v53 }
 0x5a8   : > { %v643_v55 = vsub.f32 %v635_v45, %v642_v54 }
 0x5aa   : > { %v644_v56 = vmul.f32 1.442695, %v643_v55 }
 0x5ac   : > { %2215 = vpow2.f32 %v644_v56 }
 0x5b9   : > { %v2216_v57 = vpop.eup %2215 }
 0x5ba   : > { %v646_v58 = vsel %vm374_vm2, %v2216_v57, 0.0 }
 0x5bb   : > { %v647_v59 = vrot.slane %v646_v58, 4 }
 0x5bd   : > { %v648_v60 = vadd.f32 %v647_v59, %v646_v58 }
 0x5bf   : > { %v649_v61 = vrot.slane %v648_v60, 2 }
 0x5c1   : > { %v650_v62 = vadd.f32 %v649_v61, %v648_v60 }
 0x5c3   : > { %v651_v63 = vrot.slane %v650_v62, 1 }
 0x5c5   : > { %v652_v1 = vadd.f32 %v651_v63, %v650_v62 }
 0x5c7   : > { %v653_v2 = vadd.f32 1e-08, %v652_v1 }
 0x5c9   : > { %2217 = vrcp.f32 %v653_v2 }
 0x5d6   : > { %v2218_v3 = vpop.eup %2217 }
 0x5d7   : > { %v655_v4 = vmul.f32 %v2218_v3, %v2216_v57 }
 0x5d9   : > { %v656_v5 = vmul.f32 %v2523_v42, %v655_v4 }
 0x5db   : > { %v657_v7 = vpack.c.bf16 %v656_v5, %v656_v5 }
 0x5dd   : > { %2017 = vmatmul.mubr.msk.bf16.vlgmr.msra.gmra.mxu1 %vm374_vm2, %v657_v7 }
 0x5de   : > { %2039 = vmatpush3.bf16.msra.mxu1 %v2479_v6  ;;  %2042 = vmatprep.mubr.msk.bf16.mxu1 %vm2364_vm0, %v2363_v0 }
 0x5df   : > { %2040 = vmatprep.subr.bf16.mxu1 %v2363_v0 }
 0x5e2   : > { %2041 = vmatpush3.bf16.msra.mxu1 %v2484_v9 }
 0x5e3   : > { %2046 = vmatprep.subr.bf16.mxu1 %v2363_v0 }
 0x69d   : > { %v695_v8 = vpop.f32.mrf.mxu1 }
 0x69e   : > { %v701_v10 = vadd.f32 1e-08, %v695_v8 }
 0x69f   : > { %v2018_v11 = vpop.f32.mrf.mxu1 }
 0x6a0   : > { %2219 = vrcp.f32 %v701_v10 }
 0x6a1   : > { %v698_v12 = vpop.f32.mrf.mxu1 }
 0x6a3   : > { %v2019_v16 = vpop.f32.mrf.mxu1 }
 0x6ad   : > { %v2220_v17 = vpop.eup %2219 }
 0x6ae   : > { %705 = vperm.xlu0 %2201, %v2220_v17  }
 0x729   : > { %v706_v18 = vpop.permute.xlu0 %705 }
 0x72a   : > { %v708_v19 = vmul.f32 %v706_v18, %v695_v8 }
 0x72c   : > { %v709_v20 = vpack.c.bf16 %v708_v19, %v708_v19  ;;  %v753_v21 = vmul.f32 %v708_v19, %v708_v19 }
 0x72e   : > { %2025 = vmatmul.mubr.msk.bf16.vlgmr.msra.gmra.mxu0 %vm324_vm1, %v709_v20  ;;  %v754_v22 = vsel %vm324_vm1, %v753_v21, 0.0 }
 0x72f   : > { %755 = vadd.xlane.f32.xlu0 %v754_v22  ;;  %2029 = vmatpush3.bf16.xpose.msra.mxu0 %v2498_v13 }
 0x730   : > { %2030 = vmatprep.subr.bf16.mxu0 %v2363_v0  ;;  %2034 = vmatprep.mubr.msk.bf16.mxu0 %vm2364_vm0, %v2363_v0 }
 0x737   : > { %2031 = vmatpush3.bf16.xpose.msra.mxu0 %v2504_v14 }
 0x738   : > { %2032 = vmatprep.subr.bf16.mxu0 %v2363_v0 }
 0x73f   : > { %2033 = vmatpush3.bf16.xpose.msra.mxu0 %v2510_v15 }
 0x740   : > { %2056 = vmatprep.subr.bf16.mxu0 %v2363_v0 }
 0x7b8   : > { %v756_v25 = vpop.xlane.xlu0 %755 }
 0x7ee   : > { %v747_v23 = vpop.f32.mrf.mxu0 }
 0x7ef   : > { %v757_v24 = vmul.f32 2.0, %v747_v23 }
 0x7f0   : > { %v2026_v26 = vpop.f32.mrf.mxu0 }
 0x7f1   : > { %v758_v27 = vsub.f32 %v757_v24, %v756_v25 }
 0x7f2   : > { %v750_v28 = vpop.f32.mrf.mxu0 }
 0x7f3   : > { %v759_v29 = vsel %vm374_vm2, %v758_v27, -inf }
 0x7f4   : > { %v760_v30 = vrot.slane %v759_v29, 4  ;;  %v2027_v31 = vpop.f32.mrf.mxu0 }
 0x7f6   : > { %v761_v32 = vmax.f32 %v759_v29, %v760_v30 }
 0x7f8   : > { %v762_v33 = vrot.slane %v761_v32, 2 }
 0x7fa   : > { %v763_v34 = vmax.f32 %v761_v32, %v762_v33 }
 0x7fc   : > { %v764_v35 = vrot.slane %v763_v34, 1 }
 0x7fe   : > { %v765_v36 = vmax.f32 %v763_v34, %v764_v35 }
 0x800   : > { %v766_v37 = vsub.f32 %v758_v27, %v765_v36 }
 0x802   : > { %v767_v38 = vmul.f32 1.442695, %v766_v37 }
 0x804   : > { %2221 = vpow2.f32 %v767_v38 }
 0x811   : > { %v2222_v39 = vpop.eup %2221 }
 0x812   : > { %v769_v40 = vsel %vm374_vm2, %v2222_v39, 0.0 }
 0x813   : > { %v770_v41 = vrot.slane %v769_v40, 4 }
 0x815   : > { %v771_v43 = vadd.f32 %v770_v41, %v769_v40 }
 0x817   : > { %v772_v44 = vrot.slane %v771_v43, 2 }
 0x819   : > { %v773_v45 = vadd.f32 %v772_v44, %v771_v43 }
 0x81b   : > { %v774_v46 = vrot.slane %v773_v45, 1 }
 0x81d   : > { %v775_v47 = vadd.f32 %v774_v46, %v773_v45 }
 0x81f   : > { %v776_v48 = vadd.f32 1e-08, %v775_v47 }
 0x821   : > { %2223 = vrcp.f32 %v776_v48 }
 0x82e   : > { %v2224_v49 = vpop.eup %2223 }
 0x82f   : > { %v778_v50 = vmul.f32 %v2224_v49, %v2222_v39 }
 0x831   : > { %v779_v51 = vmul.f32 %v2523_v42, %v778_v50 }
 0x833   : > { %v780_v52 = vpack.c.bf16 %v779_v51, %v779_v51 }
 0x835   : > { %2035 = vmatmul.mubr.msk.bf16.vlgmr.msra.gmra.mxu0 %vm374_vm2, %v780_v52 }
 0x836   : > { %2057 = vmatpush3.bf16.msra.mxu0 %v2479_v6  ;;  %2060 = vmatprep.mubr.msk.bf16.mxu0 %vm2364_vm0, %v2363_v0 }
 0x837   : > { %2058 = vmatprep.subr.bf16.mxu0 %v2363_v0 }
 0x83a   : > { %2059 = vmatpush3.bf16.msra.mxu0 %v2484_v9 }
 0x83b   : > { %2064 = vmatprep.subr.bf16.mxu0 %v2363_v0 }
 0x8f5   : > { %v818_v53 = vpop.f32.mrf.mxu0 }
 0x8f6   : > { %v824_v54 = vadd.f32 1e-08, %v818_v53 }
 0x8f7   : > { %v2036_v55 = vpop.f32.mrf.mxu0 }
 0x8f8   : > { %2225 = vrcp.f32 %v824_v54 }
 0x8f9   : > { %v821_v56 = vpop.f32.mrf.mxu0 }
 0x8fb   : > { %v2037_v57 = vpop.f32.mrf.mxu0 }
 0x905   : > { %v2226_v58 = vpop.eup %2225 }
 0x906   : > { %828 = vperm.xlu1 %2202, %v2226_v58  }
 0x981   : > { %v829_v59 = vpop.permute.xlu1 %828 }
 0x982   : > { %v831_v60 = vmul.f32 %v829_v59, %v818_v53 }
 0x984   : > { %v832_v61 = vpack.c.bf16 %v831_v60, %v831_v60  ;;  %v876_v62 = vmul.f32 %v831_v60, %v831_v60 }
 0x986   : > { %2043 = vmatmul.mubr.msk.bf16.vlgmr.msra.gmra.mxu1 %vm324_vm1, %v832_v61  ;;  %v877_v63 = vsel %vm324_vm1, %v876_v62, 0.0 }
 0x987   : > { %878 = vadd.xlane.f32.xlu1 %v877_v63  ;;  %2047 = vmatpush3.bf16.xpose.msra.mxu1 %v2498_v13 }
 0x988   : > { %2048 = vmatprep.subr.bf16.mxu1 %v2363_v0  ;;  %2052 = vmatprep.mubr.msk.bf16.mxu1 %vm2364_vm0, %v2363_v0 }
 0x98f   : > { %2049 = vmatpush3.bf16.xpose.msra.mxu1 %v2504_v14 }
 0x990   : > { %2050 = vmatprep.subr.bf16.mxu1 %v2363_v0 }
 0x997   : > { %2051 = vmatpush3.bf16.xpose.msra.mxu1 %v2510_v15 }
 0x998   : > { %2074 = vmatprep.subr.bf16.mxu1 %v2363_v0 }
 0xa10   : > { %v879_v3 = vpop.xlane.xlu1 %878 }
 0xa46   : > { %v870_v1 = vpop.f32.mrf.mxu1 }
 0xa47   : > { %v880_v2 = vmul.f32 2.0, %v870_v1 }
 0xa48   : > { %v2044_v4 = vpop.f32.mrf.mxu1 }
 0xa49   : > { %v881_v5 = vsub.f32 %v880_v2, %v879_v3 }
 0xa4a   : > { %v873_v7 = vpop.f32.mrf.mxu1 }
 0xa4b   : > { %v882_v8 = vsel %vm374_vm2, %v881_v5, -inf }
 0xa4c   : > { %v883_v10 = vrot.slane %v882_v8, 4  ;;  %v2045_v11 = vpop.f32.mrf.mxu1 }
 0xa4e   : > { %v884_v12 = vmax.f32 %v882_v8, %v883_v10 }
 0xa50   : > { %v885_v16 = vrot.slane %v884_v12, 2 }
 0xa52   : > { %v886_v17 = vmax.f32 %v884_v12, %v885_v16 }
 0xa54   : > { %v887_v18 = vrot.slane %v886_v17, 1 }
 0xa56   : > { %v888_v19 = vmax.f32 %v886_v17, %v887_v18 }
 0xa58   : > { %v889_v20 = vsub.f32 %v881_v5, %v888_v19 }
 0xa5a   : > { %v890_v21 = vmul.f32 1.442695, %v889_v20 }
 0xa5c   : > { %2227 = vpow2.f32 %v890_v21 }
 0xa69   : > { %v2228_v22 = vpop.eup %2227 }
 0xa6a   : > { %v892_v23 = vsel %vm374_vm2, %v2228_v22, 0.0 }
 0xa6b   : > { %v893_v24 = vrot.slane %v892_v23, 4 }
 0xa6d   : > { %v894_v25 = vadd.f32 %v893_v24, %v892_v23 }
 0xa6f   : > { %v895_v26 = vrot.slane %v894_v25, 2 }
 0xa71   : > { %v896_v27 = vadd.f32 %v895_v26, %v894_v25 }
 0xa73   : > { %v897_v28 = vrot.slane %v896_v27, 1 }
 0xa75   : > { %v898_v29 = vadd.f32 %v897_v28, %v896_v27 }
 0xa77   : > { %v899_v30 = vadd.f32 1e-08, %v898_v29 }
 0xa79   : > { %2229 = vrcp.f32 %v899_v30 }
 0xa86   : > { %v2230_v31 = vpop.eup %2229 }
 0xa87   : > { %v901_v32 = vmul.f32 %v2230_v31, %v2228_v22 }
 0xa89   : > { %v902_v33 = vmul.f32 %v2523_v42, %v901_v32 }
 0xa8b   : > { %v903_v34 = vpack.c.bf16 %v902_v33, %v902_v33 }
 0xa8d   : > { %2053 = vmatmul.mubr.msk.bf16.vlgmr.msra.gmra.mxu1 %vm374_vm2, %v903_v34 }
 0xa8e   : > { %2075 = vmatpush3.bf16.msra.mxu1 %v2479_v6  ;;  %2078 = vmatprep.mubr.msk.bf16.mxu1 %vm2364_vm0, %v2363_v0 }
 0xa8f   : > { %2076 = vmatprep.subr.bf16.mxu1 %v2363_v0 }
 0xa92   : > { %2077 = vmatpush3.bf16.msra.mxu1 %v2484_v9 }
 0xa93   : > { %2082 = vmatprep.subr.bf16.mxu1 %v2363_v0 }
 0xb4d   : > { %v941_v35 = vpop.f32.mrf.mxu1 }
 0xb4e   : > { %v947_v36 = vadd.f32 1e-08, %v941_v35 }
 0xb4f   : > { %v2054_v37 = vpop.f32.mrf.mxu1 }
 0xb50   : > { %2231 = vrcp.f32 %v947_v36 }
 0xb51   : > { %v944_v38 = vpop.f32.mrf.mxu1 }
 0xb53   : > { %v2055_v39 = vpop.f32.mrf.mxu1 }
 0xb5d   : > { %v2232_v40 = vpop.eup %2231 }
 0xb5e   : > { %951 = vperm.xlu0 %2201, %v2232_v40  }
 0xbd9   : > { %v952_v41 = vpop.permute.xlu0 %951 }
 0xbda   : > { %v954_v43 = vmul.f32 %v952_v41, %v941_v35 }
 0xbdc   : > { %v955_v44 = vpack.c.bf16 %v954_v43, %v954_v43  ;;  %v999_v45 = vmul.f32 %v954_v43, %v954_v43 }
 0xbde   : > { %2061 = vmatmul.mubr.msk.bf16.vlgmr.msra.gmra.mxu0 %vm324_vm1, %v955_v44  ;;  %v1000_v46 = vsel %vm324_vm1, %v999_v45, 0.0 }
 0xbdf   : > { %1001 = vadd.xlane.f32.xlu0 %v1000_v46  ;;  %2065 = vmatpush3.bf16.xpose.msra.mxu0 %v2498_v13 }
 0xbe0   : > { %2066 = vmatprep.subr.bf16.mxu0 %v2363_v0  ;;  %2070 = vmatprep.mubr.msk.bf16.mxu0 %vm2364_vm0, %v2363_v0 }
 0xbe7   : > { %2067 = vmatpush3.bf16.xpose.msra.mxu0 %v2504_v14 }
 0xbe8   : > { %2068 = vmatprep.subr.bf16.mxu0 %v2363_v0 }
 0xbef   : > { %2069 = vmatpush3.bf16.xpose.msra.mxu0 %v2510_v15 }
 0xbf0   : > { %2092 = vmatprep.subr.bf16.mxu0 %v2363_v0 }
 0xc68   : > { %v1002_v49 = vpop.xlane.xlu0 %1001 }
 0xc9e   : > { %v993_v47 = vpop.f32.mrf.mxu0 }
 0xc9f   : > { %v1003_v48 = vmul.f32 2.0, %v993_v47 }
 0xca0   : > { %v2062_v50 = vpop.f32.mrf.mxu0 }
 0xca1   : > { %v1004_v51 = vsub.f32 %v1003_v48, %v1002_v49 }
 0xca2   : > { %v996_v52 = vpop.f32.mrf.mxu0 }
 0xca3   : > { %v1005_v53 = vsel %vm374_vm2, %v1004_v51, -inf }
 0xca4   : > { %v1006_v54 = vrot.slane %v1005_v53, 4  ;;  %v2063_v55 = vpop.f32.mrf.mxu0 }
 0xca6   : > { %v1007_v56 = vmax.f32 %v1005_v53, %v1006_v54 }
 0xca8   : > { %v1008_v57 = vrot.slane %v1007_v56, 2 }
 0xcaa   : > { %v1009_v58 = vmax.f32 %v1007_v56, %v1008_v57 }
 0xcac   : > { %v1010_v59 = vrot.slane %v1009_v58, 1 }
 0xcae   : > { %v1011_v60 = vmax.f32 %v1009_v58, %v1010_v59 }
 0xcb0   : > { %v1012_v61 = vsub.f32 %v1004_v51, %v1011_v60 }
 0xcb2   : > { %v1013_v62 = vmul.f32 1.442695, %v1012_v61 }
 0xcb4   : > { %2233 = vpow2.f32 %v1013_v62 }
 0xcc1   : > { %v2234_v63 = vpop.eup %2233 }
 0xcc2   : > { %v1015_v1 = vsel %vm374_vm2, %v2234_v63, 0.0 }
 0xcc3   : > { %v1016_v2 = vrot.slane %v1015_v1, 4 }
 0xcc5   : > { %v1017_v3 = vadd.f32 %v1016_v2, %v1015_v1 }
 0xcc7   : > { %v1018_v4 = vrot.slane %v1017_v3, 2 }
 0xcc9   : > { %v1019_v5 = vadd.f32 %v1018_v4, %v1017_v3 }
 0xccb   : > { %v1020_v7 = vrot.slane %v1019_v5, 1 }
 0xccd   : > { %v1021_v8 = vadd.f32 %v1020_v7, %v1019_v5 }
 0xccf   : > { %v1022_v10 = vadd.f32 1e-08, %v1021_v8 }
 0xcd1   : > { %2235 = vrcp.f32 %v1022_v10 }
 0xcde   : > { %v2236_v11 = vpop.eup %2235 }
 0xcdf   : > { %v1024_v12 = vmul.f32 %v2236_v11, %v2234_v63 }
 0xce1   : > { %v1025_v16 = vmul.f32 %v2523_v42, %v1024_v12 }
 0xce3   : > { %v1026_v17 = vpack.c.bf16 %v1025_v16, %v1025_v16 }
 0xce5   : > { %2071 = vmatmul.mubr.msk.bf16.vlgmr.msra.gmra.mxu0 %vm374_vm2, %v1026_v17 }
 0xce6   : > { %2093 = vmatpush3.bf16.msra.mxu0 %v2479_v6  ;;  %2096 = vmatprep.mubr.msk.bf16.mxu0 %vm2364_vm0, %v2363_v0 }
 0xce7   : > { %2094 = vmatprep.subr.bf16.mxu0 %v2363_v0 }
 0xcea   : > { %2095 = vmatpush3.bf16.msra.mxu0 %v2484_v9 }
 0xceb   : > { %2100 = vmatprep.subr.bf16.mxu0 %v2363_v0 }
 0xda5   : > { %v1064_v18 = vpop.f32.mrf.mxu0 }
 0xda6   : > { %v1070_v19 = vadd.f32 1e-08, %v1064_v18 }
 0xda7   : > { %v2072_v20 = vpop.f32.mrf.mxu0 }
 0xda8   : > { %2237 = vrcp.f32 %v1070_v19 }
 0xda9   : > { %v1067_v21 = vpop.f32.mrf.mxu0 }
 0xdab   : > { %v2073_v22 = vpop.f32.mrf.mxu0 }
 0xdb5   : > { %v2238_v23 = vpop.eup %2237 }
 0xdb6   : > { %1074 = vperm.xlu1 %2202, %v2238_v23  }
 0xe31   : > { %v1075_v24 = vpop.permute.xlu1 %1074 }
 0xe32   : > { %v1077_v25 = vmul.f32 %v1075_v24, %v1064_v18 }
 0xe34   : > { %v1078_v26 = vpack.c.bf16 %v1077_v25, %v1077_v25  ;;  %v1122_v27 = vmul.f32 %v1077_v25, %v1077_v25 }
 0xe36   : > { %2079 = vmatmul.mubr.msk.bf16.vlgmr.msra.gmra.mxu1 %vm324_vm1, %v1078_v26  ;;  %v1123_v28 = vsel %vm324_vm1, %v1122_v27, 0.0 }
 0xe37   : > { %1124 = vadd.xlane.f32.xlu1 %v1123_v28  ;;  %2083 = vmatpush3.bf16.xpose.msra.mxu1 %v2498_v13 }
 0xe38   : > { %2084 = vmatprep.subr.bf16.mxu1 %v2363_v0  ;;  %2088 = vmatprep.mubr.msk.bf16.mxu1 %vm2364_vm0, %v2363_v0 }
 0xe3f   : > { %2085 = vmatpush3.bf16.xpose.msra.mxu1 %v2504_v14 }
 0xe40   : > { %2086 = vmatprep.subr.bf16.mxu1 %v2363_v0 }
 0xe47   : > { %2087 = vmatpush3.bf16.xpose.msra.mxu1 %v2510_v15 }
 0xe48   : > { %2110 = vmatprep.subr.bf16.mxu1 %v2363_v0 }
 0xec0   : > { %v1125_v31 = vpop.xlane.xlu1 %1124 }
 0xef6   : > { %v1116_v29 = vpop.f32.mrf.mxu1 }
 0xef7   : > { %v1126_v30 = vmul.f32 2.0, %v1116_v29 }
 0xef8   : > { %v2080_v32 = vpop.f32.mrf.mxu1 }
 0xef9   : > { %v1127_v33 = vsub.f32 %v1126_v30, %v1125_v31 }
 0xefa   : > { %v1119_v34 = vpop.f32.mrf.mxu1 }
 0xefb   : > { %v1128_v35 = vsel %vm374_vm2, %v1127_v33, -inf }
 0xefc   : > { %v1129_v36 = vrot.slane %v1128_v35, 4  ;;  %v2081_v37 = vpop.f32.mrf.mxu1 }
 0xefe   : > { %v1130_v38 = vmax.f32 %v1128_v35, %v1129_v36 }
 0xf00   : > { %v1131_v39 = vrot.slane %v1130_v38, 2 }
 0xf02   : > { %v1132_v40 = vmax.f32 %v1130_v38, %v1131_v39 }
 0xf04   : > { %v1133_v41 = vrot.slane %v1132_v40, 1 }
 0xf06   : > { %v1134_v43 = vmax.f32 %v1132_v40, %v1133_v41 }
 0xf08   : > { %v1135_v44 = vsub.f32 %v1127_v33, %v1134_v43 }
 0xf0a   : > { %v1136_v45 = vmul.f32 1.442695, %v1135_v44 }
 0xf0c   : > { %2239 = vpow2.f32 %v1136_v45 }
 0xf19   : > { %v2240_v46 = vpop.eup %2239 }
 0xf1a   : > { %v1138_v47 = vsel %vm374_vm2, %v2240_v46, 0.0 }
 0xf1b   : > { %v1139_v48 = vrot.slane %v1138_v47, 4 }
 0xf1d   : > { %v1140_v49 = vadd.f32 %v1139_v48, %v1138_v47 }
 0xf1f   : > { %v1141_v50 = vrot.slane %v1140_v49, 2 }
 0xf21   : > { %v1142_v51 = vadd.f32 %v1141_v50, %v1140_v49 }
 0xf23   : > { %v1143_v52 = vrot.slane %v1142_v51, 1 }
 0xf25   : > { %v1144_v53 = vadd.f32 %v1143_v52, %v1142_v51 }
 0xf27   : > { %v1145_v54 = vadd.f32 1e-08, %v1144_v53 }
 0xf29   : > { %2241 = vrcp.f32 %v1145_v54 }
 0xf36   : > { %v2242_v55 = vpop.eup %2241 }
 0xf37   : > { %v1147_v56 = vmul.f32 %v2242_v55, %v2240_v46 }
 0xf39   : > { %v1148_v57 = vmul.f32 %v2523_v42, %v1147_v56 }
 0xf3b   : > { %v1149_v58 = vpack.c.bf16 %v1148_v57, %v1148_v57 }
 0xf3d   : > { %2089 = vmatmul.mubr.msk.bf16.vlgmr.msra.gmra.mxu1 %vm374_vm2, %v1149_v58 }
 0xf3e   : > { %2111 = vmatpush3.bf16.msra.mxu1 %v2479_v6  ;;  %2114 = vmatprep.mubr.msk.bf16.mxu1 %vm2364_vm0, %v2363_v0 }
 0xf3f   : > { %2112 = vmatprep.subr.bf16.mxu1 %v2363_v0 }
 0xf42   : > { %2113 = vmatpush3.bf16.msra.mxu1 %v2484_v9 }
 0xf43   : > { %2118 = vmatprep.subr.bf16.mxu1 %v2363_v0 }
 0xffd   : > { %v1187_v59 = vpop.f32.mrf.mxu1 }
 0xffe   : > { %v1193_v60 = vadd.f32 1e-08, %v1187_v59 }
 0xfff   : > { %v2090_v61 = vpop.f32.mrf.mxu1 }
0x1000   : > { %2243 = vrcp.f32 %v1193_v60 }
0x1001   : > { %v1190_v62 = vpop.f32.mrf.mxu1 }
0x1003   : > { %v2091_v63 = vpop.f32.mrf.mxu1 }
0x100d   : > { %v2244_v1 = vpop.eup %2243 }
0x100e   : > { %1197 = vperm.xlu0 %2201, %v2244_v1  }
0x1089   : > { %v1198_v2 = vpop.permute.xlu0 %1197 }
0x108a   : > { %v1200_v3 = vmul.f32 %v1198_v2, %v1187_v59 }
0x108c   : > { %v1201_v4 = vpack.c.bf16 %v1200_v3, %v1200_v3  ;;  %v1245_v5 = vmul.f32 %v1200_v3, %v1200_v3 }
0x108e   : > { %2097 = vmatmul.mubr.msk.bf16.vlgmr.msra.gmra.mxu0 %vm324_vm1, %v1201_v4  ;;  %v1246_v7 = vsel %vm324_vm1, %v1245_v5, 0.0 }
0x108f   : > { %1247 = vadd.xlane.f32.xlu0 %v1246_v7  ;;  %2101 = vmatpush3.bf16.xpose.msra.mxu0 %v2498_v13 }
0x1090   : > { %2102 = vmatprep.subr.bf16.mxu0 %v2363_v0  ;;  %2106 = vmatprep.mubr.msk.bf16.mxu0 %vm2364_vm0, %v2363_v0 }
0x1097   : > { %2103 = vmatpush3.bf16.xpose.msra.mxu0 %v2504_v14 }
0x1098   : > { %2104 = vmatprep.subr.bf16.mxu0 %v2363_v0 }
0x109f   : > { %2105 = vmatpush3.bf16.xpose.msra.mxu0 %v2510_v15 }
0x10a0   : > { %2128 = vmatprep.subr.bf16.mxu0 %v2363_v0 }
0x1118   : > { %v1248_v11 = vpop.xlane.xlu0 %1247 }
0x114e   : > { %v1239_v8 = vpop.f32.mrf.mxu0 }
0x114f   : > { %v1249_v10 = vmul.f32 2.0, %v1239_v8 }
0x1150   : > { %v2098_v12 = vpop.f32.mrf.mxu0 }
0x1151   : > { %v1250_v16 = vsub.f32 %v1249_v10, %v1248_v11 }
0x1152   : > { %v1242_v17 = vpop.f32.mrf.mxu0 }
0x1153   : > { %v1251_v18 = vsel %vm374_vm2, %v1250_v16, -inf }
0x1154   : > { %v1252_v19 = vrot.slane %v1251_v18, 4  ;;  %v2099_v20 = vpop.f32.mrf.mxu0 }
0x1156   : > { %v1253_v21 = vmax.f32 %v1251_v18, %v1252_v19 }
0x1158   : > { %v1254_v22 = vrot.slane %v1253_v21, 2 }
0x115a   : > { %v1255_v23 = vmax.f32 %v1253_v21, %v1254_v22 }
0x115c   : > { %v1256_v24 = vrot.slane %v1255_v23, 1 }
0x115e   : > { %v1257_v25 = vmax.f32 %v1255_v23, %v1256_v24 }
0x1160   : > { %v1258_v26 = vsub.f32 %v1250_v16, %v1257_v25 }
0x1162   : > { %v1259_v27 = vmul.f32 1.442695, %v1258_v26 }
0x1164   : > { %2245 = vpow2.f32 %v1259_v27 }
0x1171   : > { %v2246_v28 = vpop.eup %2245 }
0x1172   : > { %v1261_v29 = vsel %vm374_vm2, %v2246_v28, 0.0 }
0x1173   : > { %v1262_v30 = vrot.slane %v1261_v29, 4 }
0x1175   : > { %v1263_v31 = vadd.f32 %v1262_v30, %v1261_v29  ;;  %v2265_v29 = vld [vmem:[%s2474_s17 + $0x20] sm:$0xf]  ;;  %v2266_v30 = vld [vmem:[%s2474_s17 + $0x18] sm:$0xff] }
0x1177   : > { %v1264_v32 = vrot.slane %v1263_v31, 2 }
0x1179   : > { %v1265_v33 = vadd.f32 %v1264_v32, %v1263_v31  ;;  %v2267_v31 = vld [vmem:[%s2474_s17 + $0x10] sm:$0xff]  ;;  %v2268_v32 = vld [vmem:[%s2474_s17 + $0x8] sm:$0xff] }
0x117b   : > { %v1266_v34 = vrot.slane %v1265_v33, 1 }
0x117d   : > { %v1267_v35 = vadd.f32 %v1266_v34, %v1265_v33  ;;  %v2269_v33 = vld [vmem:[%s2474_s17] sm:$0xff] }
0x117f   : > { %v1268_v36 = vadd.f32 1e-08, %v1267_v35 }
0x1181   : > { %2247 = vrcp.f32 %v1268_v36 }
0x118e   : > { %v2248_v37 = vpop.eup %2247 }
0x118f   : > { %v1270_v38 = vmul.f32 %v2248_v37, %v2246_v28 }
0x1191   : > { %v1271_v39 = vmul.f32 %v2523_v42, %v1270_v38 }
0x1193   : > { %v1272_v40 = vpack.c.bf16 %v1271_v39, %v1271_v39 }
0x1195   : > { %2107 = vmatmul.mubr.msk.bf16.vlgmr.msra.gmra.mxu0 %vm374_vm2, %v1272_v40 }
0x1196   : > { %2129 = vmatpush3.bf16.msra.mxu0 %v2479_v6  ;;  %2132 = vmatprep.mubr.msk.bf16.mxu0 %vm2364_vm0, %v2363_v0 }
0x1197   : > { %2130 = vmatprep.subr.bf16.mxu0 %v2363_v0 }
0x119a   : > { %2131 = vmatpush3.bf16.msra.mxu0 %v2484_v9 }
0x119b   : > { %2136 = vmatprep.subr.mxu0 %v2363_v0 }
0x1255   : > { %v1310_v41 = vpop.f32.mrf.mxu0 }
0x1256   : > { %v1316_v43 = vadd.f32 1e-08, %v1310_v41 }
0x1257   : > { %v2108_v44 = vpop.f32.mrf.mxu0 }
0x1258   : > { %2249 = vrcp.f32 %v1316_v43 }
0x1259   : > { %v1313_v45 = vpop.f32.mrf.mxu0 }
0x125b   : > { %v2109_v46 = vpop.f32.mrf.mxu0 }
0x1265   : > { %v2250_v47 = vpop.eup %2249 }
0x1266   : > { %1320 = vperm.xlu1 %2202, %v2250_v47  }
0x12e1   : > { %v1321_v48 = vpop.permute.xlu1 %1320 }
0x12e2   : > { %v1323_v49 = vmul.f32 %v1321_v48, %v1310_v41 }
0x12e4   : > { %v1324_v6 = vpack.c.bf16 %v1323_v49, %v1323_v49  ;;  %v1368_v50 = vmul.f32 %v1323_v49, %v1323_v49 }
0x12e6   : > { %2115 = vmatmul.mubr.msk.bf16.vlgmr.msra.gmra.mxu1 %vm324_vm1, %v1324_v6  ;;  %v1369_v51 = vsel %vm324_vm1, %v1368_v50, 0.0 }
0x12e7   : > { %1370 = vadd.xlane.f32.xlu1 %v1369_v51  ;;  %2119 = vmatpush3.bf16.xpose.msra.mxu1 %v2498_v13 }
0x12e8   : > { %2120 = vmatprep.subr.bf16.mxu1 %v2363_v0  ;;  %2124 = vmatprep.mubr.msk.bf16.mxu1 %vm2364_vm0, %v2363_v0 }
0x12ef   : > { %2121 = vmatpush3.bf16.xpose.msra.mxu1 %v2504_v14 }
0x12f0   : > { %2122 = vmatprep.subr.bf16.mxu1 %v2363_v0 }
0x12f7   : > { %2123 = vmatpush3.bf16.xpose.msra.mxu1 %v2510_v15 }
0x1370   : > { %v1371_v53 = vpop.xlane.xlu1 %1370 }
0x13a6   : > { %v1362_v9 = vpop.f32.mrf.mxu1 }
0x13a7   : > { %v1372_v52 = vmul.f32 2.0, %v1362_v9 }
0x13a8   : > { %v2116_v54 = vpop.f32.mrf.mxu1 }
0x13a9   : > { %v1373_v55 = vsub.f32 %v1372_v52, %v1371_v53 }
0x13aa   : > { %v1365_v56 = vpop.f32.mrf.mxu1 }
0x13ab   : > { %v1374_v57 = vsel %vm374_vm2, %v1373_v55, -inf }
0x13ac   : > { %v1375_v13 = vrot.slane %v1374_v57, 4  ;;  %v2117_v58 = vpop.f32.mrf.mxu1 }
0x13ad   : > { %v2270_v58 = vld [vmem:[%s2520_s20] ss:$0 sm:$0xff]  ;;  %s2271_s20 = scalar_lea.vmem %s1674_s15, 128 }
0x13ae   : > { %v1376_v59 = vmax.f32 %v1374_v57, %v1375_v13  ;;  %p2272_p11 = scmp.ne.s32.totalorder %s1674_s15, %s2271_s20 }
0x13b0   : > { %v1377_v60 = vrot.slane %v1376_v59, 2  ;;  %p2273_p12 = pnand %p2272_p11, %p2443_p5 }
0x13b2   : > { %v1378_v61 = vmax.f32 %v1376_v59, %v1377_v60  ;;  %p2274_p13 = pneg %p2273_p12 }
0x13b4   : > { %v1379_v62 = vrot.slane %v1378_v61, 1 }
0x13b6   : > { %v1380_v63 = vmax.f32 %v1378_v61, %v1379_v62 }
0x13b8   : > { %v1381_v14 = vsub.f32 %v1373_v55, %v1380_v63 }
0x13ba   : > { %v1382_v1 = vmul.f32 1.442695, %v1381_v14 }
0x13bc   : > { %2251 = vpow2.f32 %v1382_v1 }
0x13c9   : > { %v2252_v2 = vpop.eup %2251 }
0x13ca   : > { %v1384_v15 = vsel %vm374_vm2, %v2252_v2, 0.0 }
0x13cb   : > { %v1385_v3 = vrot.slane %v1384_v15, 4 }
0x13cd   : > { %v1386_v4 = vadd.f32 %v1385_v3, %v1384_v15 }
0x13cf   : > { %v1387_v5 = vrot.slane %v1386_v4, 2 }
0x13d1   : > { %v1388_v7 = vadd.f32 %v1387_v5, %v1386_v4 }
0x13d3   : > { %v1389_v8 = vrot.slane %v1388_v7, 1 }
0x13d5   : > { %v1390_v10 = vadd.f32 %v1389_v8, %v1388_v7 }
0x13d7   : > { %v1391_v11 = vadd.f32 1e-08, %v1390_v10 }
0x13d9   : > { %2253 = vrcp.f32 %v1391_v11 }
0x13e6   : > { %v2254_v12 = vpop.eup %2253 }
0x13e7   : > { %v1393_v16 = vmul.f32 %v2254_v12, %v2252_v2 }
0x13e9   : > { %v1394_v17 = vmul.f32 %v2523_v42, %v1393_v16 }
0x13eb   : > { %v1395_v18 = vpack.c.bf16 %v1394_v17, %v1394_v17 }
0x13ed   : > { %2125 = vmatmul.mubr.msk.bf16.vlgmr.msra.gmra.mxu1 %vm374_vm2, %v1395_v18 }
0x14ad   : > { %v1433_v19 = vpop.f32.mrf.mxu1 }
0x14ae   : > { %v1439_v20 = vadd.f32 1e-08, %v1433_v19 }
0x14af   : > { %v2126_v21 = vpop.f32.mrf.mxu1 }
0x14b0   : > { %2255 = vrcp.f32 %v1439_v20 }
0x14b1   : > { %v1436_v22 = vpop.f32.mrf.mxu1 }
0x14b3   : > { %v2127_v23 = vpop.f32.mrf.mxu1 }
0x14bd   : > { %v2256_v24 = vpop.eup %2255 }
0x14be   : > { %1443 = vperm.xlu0 %2201, %v2256_v24  }
0x1539   : > { %v1444_v25 = vpop.permute.xlu0 %1443 }
0x153a   : > { %v1446_v26 = vmul.f32 %v1444_v25, %v1433_v19 }
0x153c   : > { %v1447_v27 = vpack.c.bf16 %v1446_v26, %v1446_v26  ;;  %v1491_v28 = vmul.f32 %v1446_v26, %v1446_v26 }
0x153e   : > { %2133 = vmatmul.mubr.msk.bf16.vlgmr.msra.gmra.mxu0 %vm324_vm1, %v1447_v27  ;;  %v1492_v42 = vsel %vm324_vm1, %v1491_v28, 0.0 }
0x153f   : > { %1493 = vadd.xlane.f32.xlu0 %v1492_v42  ;;  %2137 = vmatpush3.xpose.msk.msra.mxu0 %vm374_vm2, %v2265_v29 }
0x1540   : > { %2138 = vmatprep.subr.mxu0 %v2363_v0  ;;  %2146 = vmatprep.mubr.msk.f32.mxu0 %vm2364_vm0, %v2363_v0 }
0x1543   : > { %2139 = vmatpush3.xpose.msk.msra.mxu0 %vm374_vm2, %v2266_v30 }
0x1544   : > { %2140 = vmatprep.subr.mxu0 %v2363_v0 }
0x1547   : > { %2141 = vmatpush3.xpose.msk.msra.mxu0 %vm374_vm2, %v2267_v31 }
0x1548   : > { %2142 = vmatprep.subr.mxu0 %v2363_v0 }
0x154b   : > { %2143 = vmatpush3.xpose.msk.msra.mxu0 %vm374_vm2, %v2268_v32 }
0x154c   : > { %2144 = vmatprep.subr.mxu0 %v2363_v0 }
0x154f   : > { %2145 = vmatpush3.xpose.msk.msra.mxu0 %vm374_vm2, %v2269_v33 }
0x15c8   : > { %v1494_v36 = vpop.xlane.xlu0 %1493 }
0x15fe   : > { %v1485_v34 = vpop.f32.mrf.mxu0 }
0x15ff   : > { %v1495_v35 = vmul.f32 2.0, %v1485_v34 }
0x1600   : > { %v2134_v37 = vpop.f32.mrf.mxu0 }
0x1601   : > { %v1496_v38 = vsub.f32 %v1495_v35, %v1494_v36 }
0x1602   : > { %v1488_v39 = vpop.f32.mrf.mxu0 }
0x1603   : > { %v1497_v40 = vsel %vm374_vm2, %v1496_v38, -inf }
0x1604   : > { %v1498_v41 = vrot.slane %v1497_v40, 4  ;;  %v2135_v43 = vpop.f32.mrf.mxu0 }
0x1606   : > { %v1499_v44 = vmax.f32 %v1497_v40, %v1498_v41 }
0x1608   : > { %v1500_v45 = vrot.slane %v1499_v44, 2 }
0x160a   : > { %v1501_v46 = vmax.f32 %v1499_v44, %v1500_v45 }
0x160c   : > { %v1502_v47 = vrot.slane %v1501_v46, 1 }
0x160e   : > { %v1503_v48 = vmax.f32 %v1501_v46, %v1502_v47 }
0x1610   : > { %v1504_v0 = vsub.f32 %v1496_v38, %v1503_v48 }
0x1612   : > { %v1505_v49 = vmul.f32 1.442695, %v1504_v0 }
0x1614   : > { %2257 = vpow2.f32 %v1505_v49 }
0x1621   : > { %v2258_v6 = vpop.eup %2257 }
0x1622   : > { %v1507_v50 = vsel %vm374_vm2, %v2258_v6, 0.0 }
0x1623   : > { %v1508_v51 = vrot.slane %v1507_v50, 4 }
0x1625   : > { %v1509_v9 = vadd.f32 %v1508_v51, %v1507_v50 }
0x1627   : > { %v1510_v52 = vrot.slane %v1509_v9, 2 }
0x1629   : > { %v1511_v53 = vadd.f32 %v1510_v52, %v1509_v9 }
0x162b   : > { %v1512_v54 = vrot.slane %v1511_v53, 1 }
0x162d   : > { %v1513_v55 = vadd.f32 %v1512_v54, %v1511_v53 }
0x162f   : > { %v1514_v56 = vadd.f32 1e-08, %v1513_v55 }
0x1631   : > { %2259 = vrcp.f32 %v1514_v56 }
0x163e   : > { %v2260_v57 = vpop.eup %2259 }
0x163f   : > { %v1516_v13 = vmul.f32 %v2260_v57, %v2258_v6 }
0x1641   : > { %v1517_v59 = vmul.f32 %v2270_v58, %v1516_v13  ;;  %1633 = vst.msk [vmem:[%s2711_s29] sm:$0xff] %vm374_vm2, %v1516_v13 }
0x1643   : > { %2147 = vmatmul.mubr.msk.f32.vlgmr.msra.gmra.mxu0 %vm374_vm2, %v1517_v59 }
0x1703   : > { %v2716_v60 = vpop.f32.mrf.mxu0 }
0x1704   : > { %1615 = vrot.lane.b32.xlu1 %v2716_v60, %s2805_s9  ;;  %v1606_v61 = vadd.f32 1e-08, %v2716_v60  ;;  %s2275_s9 = sshll.u32 %s2367_s28, 4  ;;  %s2276_s9 = int_to_ptr.vmem [resolvable:$false] %s2275_s9 }
0x1705   : > { %v2148_v62 = vpop.f32.mrf.mxu0  ;;  %p2278_p0 = scmp.lt.s32.totalorder %s1674_s15, %s2276_s9 }
0x1706   : > { %1609 = vperm.xlu0 %2201, %v1606_v61  }
0x1776   : > { %v1616_v63 = vpop.permute.xlu1 %1615 }
0x1777   : > { %v1619_v14 = vsel %vm1618_vm3, %v1616_v63, 0.0 }
0x1778   : > { %1620 = vadd.xlane.f32.xlu1 %v1619_v14 }
0x1781   : > { %v1610_v1 = vpop.permute.xlu0 %1609 }
0x1782   : > { %2261 = vrcp.f32 %v1610_v1 }
0x178f   : > { %v2262_v2 = vpop.eup %2261 }
0x1790   : > { %v2723_v15 = vmul.f32 %v2262_v2, %v2716_v60 }
0x1792   : > { %1645 = vst.msk [vmem:[%s2725_s10] sm:$0xff] %vm324_vm1, %v2723_v15 }
0x1801   : > { %v1621_v3 = vpop.xlane.xlu1 %1620 }
0x1802   : > { %v1622_v4 = vrot.slane %v1621_v3, 4 }
0x1804   : > { %v1623_v5 = vadd.f32 %v1622_v4, %v1621_v3 }
0x1806   : > { %v1624_v7 = vrot.slane %v1623_v5, 2 }
0x1808   : > { %v1625_v8 = vadd.f32 %v1624_v7, %v1623_v5 }
0x180a   : > { %v1626_v10 = vrot.slane %v1625_v8, 1 }
0x180c   : > { %v1627_v11 = vadd.f32 %v1626_v10, %v1625_v8 }
0x180e   : > { %2150 = vpush %v1627_v11 }
0x183f   : > { %s2151_s12 = spop %2150 }
0x1840   : > { %s1629_s13 = sadd.f32 1e-08, %s2151_s12  ;;  %s2277_s12 = scalar_lea.vmem %s2276_s9, 256 }
0x1841   : > { %p2279_p1 = scmp.lt.s32.totalorder %s2277_s12, %s2271_s20 }
0x1842   : > { %v1630_v12 = vstv %s1629_s13 }
0x1843   : > { %2263 = vrcp.f32 %v1630_v12  ;;  %p2280_p2 = por %p2279_p1, %p2278_p0 }
0x1845   : > { %p2281_p3 = pnand %p2280_p2, %p2274_p13 }
0x1847   : > { %2284 = shalt.err (!%p2281_p3)
}
0x1848   : > { %s2285_s29 = scalar_lea.hbm %s1671_s18, 128  ;;  %s2289_s17 = scalar_lea.hbm %s2801_s3, 256 }
0x1849   : > { %p2286_p4 = scmp.ne.s32.totalorder %s1671_s18, %s2285_s29  ;;  %p2290_p9 = scmp.lt.s32.totalorder %s1671_s18, %s2801_s3 }
0x184a   : > { %p2291_p10 = scmp.lt.s32.totalorder %s2289_s17, %s2285_s29 }
0x184b   : > { %p2287_p7 = pnand %p2286_p4, %p2443_p5 }
0x184c   : > { %p2292_p11 = por %p2291_p10, %p2290_p9 }
0x184d   : > { %p2288_p8 = pneg %p2287_p7 }
0x184f   : > { %p2293_p12 = pnand %p2292_p11, %p2288_p8 }
0x1851   : > { %2296 = shalt.err (!%p2293_p12)
}
0x1852   : > { %2152 = dma.vmem_to_hbm [thread:$0]  (%p2443_p5), %s1674_s15, 128, %s1671_s18, %s1647_s19  }
0x1853   : > { %s2811_s9 = sshll.u32 %s2426_s25, 7  ;;  %s1692_s13 = sshll.u32 %s2725_s10, 4  ;;  %s1693_s13 = int_to_ptr.vmem [resolvable:$true] %s1692_s13 }
0x1854   : > { %s1690_s12 = scalar_lea.hbm %s2804_s6, %s2811_s9  ;;  %s1660_s0 = scalar_lea.sflag [#allocation5], %s2707_s26 }
0x1855   : > { %s2297_s14 = scalar_lea.vmem %s1693_s13, 128  ;;  %s2368_s29 = smov [#allocation4]  }
0x1856   : > { %p2298_p13 = scmp.ne.s32.totalorder %s1693_s13, %s2297_s14  ;;  %s2301_s16 = sshll.u32 %s2368_s29, 4  ;;  %s2302_s16 = int_to_ptr.vmem [resolvable:$false] %s2301_s16 }
0x1857   : > { %s2303_s17 = scalar_lea.vmem %s2302_s16, 256  ;;  %p2304_p2 = scmp.lt.s32.totalorder %s1693_s13, %s2302_s16 }
0x1858   : > { %p2299_p0 = pnand %p2298_p13, %p2443_p5  ;;  %p2305_p3 = scmp.lt.s32.totalorder %s2303_s17, %s2297_s14 }
0x185a   : > { %p2300_p1 = pneg %p2299_p0  ;;  %p2306_p4 = por %p2305_p3, %p2304_p2 }
0x185c   : > { %p2307_p7 = pnand %p2306_p4, %p2300_p1 }
0x185e   : > { %2310 = shalt.err (!%p2307_p7)
}
0x185f   : > { %s2311_s25 = scalar_lea.hbm %s1690_s12, 128  ;;  %s2315_s15 = scalar_lea.hbm %s2804_s6, 256 }
0x1860   : > { %p2312_p8 = scmp.ne.s32.totalorder %s1690_s12, %s2311_s25  ;;  %p2316_p11 = scmp.lt.s32.totalorder %s1690_s12, %s2804_s6 }
0x1861   : > { %p2317_p12 = scmp.lt.s32.totalorder %s2315_s15, %s2311_s25 }
0x1862   : > { %p2313_p9 = pnand %p2312_p8, %p2443_p5 }
0x1863   : > { %p2318_p13 = por %p2317_p12, %p2316_p11 }
0x1864   : > { %p2314_p10 = pneg %p2313_p9 }
0x1866   : > { %p2319_p0 = pnand %p2318_p13, %p2314_p10 }
0x1868   : > { %2322 = shalt.err (!%p2319_p0)
}
0x1869   : > { %2153 = dma.vmem_to_hbm [thread:$0]  (%p2443_p5), %s1693_s13, 128, %s1690_s12, %s1660_s0   ;;  %v2264_v16 = vpop.eup %2263  ;;  %vm1643_vm4 = vcmask 23552  }
0x186a   : > { %v1632_v17 = vmul.f32 %v2264_v16, %v2716_v60  ;;  %s2812_s9 = smov 96   ;;  %s2369_s20 = smov 95  }
0x186b   : > { %s307_s29 = scalar_lea.vmem %s2802_s4, %s2465_s11  ;;  %s311_s17 = scalar_lea.vmem %s2803_s5, %s2465_s11 }
0x186c   : > { %1635 = vrot.lane.b32.xlu0 %v1632_v17, %s2812_s9 }
0x1870   : > { %1640 = vrot.lane.b32.xlu0 %v2723_v15, %s2369_s20 }
0x18de   : > { %v1636_v18 = vpop.permute.xlu0 %1635 }
0x18df   : > { %1638 = vst.msk [vmem:[%s307_s29] sm:$0xff] %vm1618_vm3, %v1636_v18 }
0x18e2   : > { %v1641_v19 = vpop.permute.xlu0 %1640 }
0x18e3   : > { %1644 = vst.msk [vmem:[%s311_s17] sm:$0xff] %vm1643_vm4, %v1641_v19 }
0x18e4 PF: > { %p2163_p5 = scmp.ge.s32.totalorder %s2361_s24, 2  ;;  %s1704_s12 = sand.u32 1, %s2349_s21  }
0x18e5   : > { %s1705_s13 = scalar_lea.sflag [#allocation3], %s1704_s12 }
0x18e6   : > { %p2157_p1 = pnand %p2163_p5, %p2447_p6 }
0x18e8   : > { %p2158_p2 = pneg %p2157_p1 }
0x18ea   : > { %2340 = dma.done.wait (%p2158_p2), %s1705_s13, 128  }
0x18eb   : > { %2342 = vsyncadd (%p2158_p2), %s1705_s13, 4294967168  ;;  %s1728_s0 = scalar_lea.sflag [#allocation5], %s1704_s12 }
0x18ec   : > { %2344 = dma.done.wait (%p2158_p2), %s1728_s0, 128  }
0x18ed   : > { %2346 = vsyncadd (%p2158_p2), %s1728_s0, 4294967168  ;;  %p20_p3 = scmp.ge.s32.totalorder %s2430_s27, 4   ;;  %s2813_s21 = smov %s2353_s22 }
0x18ee   : > { %s2814_s22 = smov %s2357_s23  ;;  %s2815_s23 = smov %s2441_s30 }
0x18ef   : > { %s2816_s24 = smov %s2430_s27  ;;  %22 = sbr.rel (!%p20_p3) target bundleno = 7 (0x7), region = 114 }
0x18f4   :  { %1733 = vsyncpa [#allocation3], 1 }
0x18f5   :  { %1735 = vsyncpa [#allocation3 + $0x1], 1 }
0x18f6   :  { %1736 = vsyncpa [#allocation5], 1 }
0x18f7   :  { %1738 = vsyncpa [#allocation5 + $0x1], 1 }

</bundles_post_ra>
